<compile_context>
chip_gen: v6e
topology: v6e:2x2x1
jax: 0.10.0
libtpu: 0.0.40
codegen_flags: <defaults>
</compile_context>

<pallas_src>
import math

import numpy as np
import jax
import jax.numpy as jnp
from jax.experimental import pallas as pl
from jax.experimental.pallas import tpu as pltpu


def _vmem_capacity_bytes():
    """Physical VMEM of the current generation; conservative 64 MiB (v7x) fallback."""
    try:
        info = pltpu.get_tpu_info()
        for attr in ("vmem_capacity_bytes", "vmem_bytes", "vmem_size_bytes"):
            cap = getattr(info, attr, None)
            if cap:
                return int(cap)
    except Exception:
        pass
    return 64 * 1024 * 1024


def _choose_d_tile(D, per_row_bytes, budget_bytes, align=128):
    """Channel-tile selection.  If the whole channel dim fits the per-buffer budget,
    keep it resident (no tiling, no padding).  Otherwise use an MXU-M-aligned tile
    (multiple of `align`) and pad D up to a multiple of it."""
    if D * per_row_bytes <= budget_bytes:
        return D, D
    d_tile = max(align, (budget_bytes // (per_row_bytes * align)) * align)
    nd = -(-D // d_tile)
    return d_tile, nd * d_tile


def _make_roi_kernel(H, W, TPP, max_gh, max_gw, compute_dtype):
    Hf, Wf = float(H), float(W)

    def kernel(params_ref, rh_ref, rw_ref, f_ref, o_ref):
        prm = params_ref[0, 0]                                     # (8, TPP)
        y_base, y_step, gh = prm[0:1, :], prm[1:2, :], prm[2:3, :]
        x_base, x_step, gw = prm[3:4, :], prm[4:5, :], prm[5:6, :]
        inv_count = prm[6:7, :]

        h_grid = jax.lax.broadcasted_iota(jnp.int32, (H, TPP), 0).astype(jnp.float32)
        w_grid = jax.lax.broadcasted_iota(jnp.int32, (W, TPP), 0).astype(jnp.float32)

        # 1-D bilinear weights along h, accumulated over the masked adaptive
        # sampling grid (sampling_ratio = -1 -> grid = ceil(roi_extent/pooled)).
        # Static unroll: trip count is small (= ceil(H/PH)); per-iter temps are a
        # handful of vregs at realistic TPP.
        wy = jnp.zeros((H, TPP), jnp.float32)
        for iy in range(max_gh):
            y = y_base + (iy + 0.5) * y_step                        # (1, TPP)
            valid = (float(iy) < gh) & (y >= -1.0) & (y <= Hf)
            yc = jnp.clip(y, 0.0, Hf - 1.0)
            tap = jnp.maximum(0.0, 1.0 - jnp.abs(yc - h_grid))      # (H, TPP)
            wy = wy + jnp.where(valid, tap, 0.0)

        wx = jnp.zeros((W, TPP), jnp.float32)
        for ix in range(max_gw):
            x = x_base + (ix + 0.5) * x_step
            valid = (float(ix) < gw) & (x >= -1.0) & (x <= Wf)
            xc = jnp.clip(x, 0.0, Wf - 1.0)
            tap = jnp.maximum(0.0, 1.0 - jnp.abs(xc - w_grid))      # (W, TPP)
            wx = wx + jnp.where(valid, tap, 0.0)

        wy = wy * inv_count                                         # fold 1/count

        # Expand onto the flattened spatial axis with exact one-hot matmuls and
        # combine:  Mt[h*W+w, col] = Wy[h, col] * Wx[w, col].
        y_exp = jnp.dot(rh_ref[...], wy, preferred_element_type=jnp.float32)
        x_exp = jnp.dot(rw_ref[...], wx, preferred_element_type=jnp.float32)
        mt = (y_exp * x_exp).astype(compute_dtype)                  # (H*W, TPP)

        # Main contraction: [d_tile, H*W] @ [H*W, TPP] -> [d_tile, TPP].
        out = jnp.dot(f_ref[0], mt, preferred_element_type=jnp.float32)
        o_ref[0, 0] = out.astype(o_ref.dtype)

    return kernel


class ObjectsCropsPallas:
    def __init__(self, video_hw, output_size, compute_dtype=jnp.bfloat16):
        self.video_hw = video_hw
        if isinstance(output_size, (int, float)):
            output_size = (int(output_size), int(output_size))
        assert len(output_size) == 2
        self.output_size = tuple(int(s) for s in output_size)
        # bf16 (default): ~2-4x MXU throughput, half the feature HBM/VMEM bytes,
        # ~1e-2 relative error.  float32: matches torchvision to ~1e-4.
        self.compute_dtype = compute_dtype

    def __call__(self, features, boxes):
        """
        features: [BS, d, H, W]  (NCHW, like the PyTorch module)
        boxes:    [BS, O, 4]     (x1, y1, x2, y2) in original video coordinates
        returns:  [BS, O, d, PH, PW]
        """
        BS, D, H, W = features.shape
        O = boxes.shape[1]
        PH, PW = self.output_size
        PP = PH * PW
        HW = H * W
        Horig, Worig = self.video_hw
        scale = H / Horig                    # matches [H/Horig, W/Worig][0]

        # ---- tiling -----------------------------------------------------------
        O_TILE = max(1, -(-256 // PP))       # TPP >= 256 fills the 256-wide MXU N dim
        NT = -(-O // O_TILE)
        O_pad = NT * O_TILE
        TPP = O_TILE * PP

        bytes_f = jnp.dtype(self.compute_dtype).itemsize
        bytes_out = jnp.dtype(features.dtype).itemsize
        vmem_cap = _vmem_capacity_bytes()

        mt_bytes = HW * TPP * 4
        fixed = (16 << 20) + 4 * mt_bytes + 2 * HW * (H + W) * 4 + 16 * TPP * 4
        per_row_bytes = HW * bytes_f + TPP * bytes_out          # feature + output row
        budget = max(4 << 20, (vmem_cap - fixed) // 3)          # per (single) buffer
        d_tile, D_pad = _choose_d_tile(D, per_row_bytes, budget)
        ND = D_pad // d_tile

        # TODO(synk): sampling_ratio=-1 is adaptive; the static sample caps assume
        # boxes lie within the original video frame (grid <= ceil(frame*scale/pooled)).
        max_gh = max(1, int(math.ceil(Horig * scale / PH)))
        max_gw = max(1, int(math.ceil(Worig * scale / PW)))

        # ---- per-box scalar math, hoisted out of the kernel (one XLA pass) ------
        b32 = boxes.astype(jnp.float32)
        if O_pad > O:
            b32 = jnp.pad(b32, ((0, 0), (0, O_pad - O), (0, 0)))   # zero boxes -> zero rows
        x1, y1, x2, y2 = (b32[..., i] for i in range(4))           # [BS, O_pad]
        start_w = x1 * scale - 0.5
        start_h = y1 * scale - 0.5
        roi_w = (x2 * scale - 0.5) - start_w
        roi_h = (y2 * scale - 0.5) - start_h
        bin_h, bin_w = roi_h / PH, roi_w / PW
        grid_h, grid_w = jnp.ceil(roi_h / PH), jnp.ceil(roi_w / PW)
        inv_count = 1.0 / jnp.maximum(grid_h * grid_w, 1.0)
        step_y = bin_h / jnp.maximum(grid_h, 1.0)
        step_x = bin_w / jnp.maximum(grid_w, 1.0)

        col = np.arange(TPP)
        p_col = jnp.asarray(((col % PP) // PW).astype(np.float32))  # pooled row of column
        q_col = jnp.asarray((col % PW).astype(np.float32))          # pooled col of column

        def per_col(v):                                             # [BS,O_pad] -> [BS,NT,TPP]
            v = v.reshape(BS, NT, O_TILE, 1)
            return jnp.broadcast_to(v, (BS, NT, O_TILE, PP)).reshape(BS, NT, TPP)

        params = jnp.stack(
            [per_col(start_h) + p_col * per_col(bin_h),             # y_base
             per_col(step_y),
             per_col(grid_h),
             per_col(start_w) + q_col * per_col(bin_w),             # x_base
             per_col(step_x),
             per_col(grid_w),
             per_col(inv_count),
             jnp.zeros((BS, NT, TPP), jnp.float32)],                # pad to 8 sublanes
            axis=2)                                                 # [BS, NT, 8, TPP]

        # Box-independent one-hot expanders (hw -> h) and (hw -> w), host constants.
        hw_idx = np.arange(HW)
        r_h = jnp.asarray((hw_idx[:, None] // W == np.arange(H)[None, :]).astype(np.float32))
        r_w = jnp.asarray((hw_idx[:, None] % W == np.arange(W)[None, :]).astype(np.float32))

        # NCHW -> [BS, D, H*W] (free); cast to compute dtype in the wrapper so the
        # kernel streams half-width feature bytes and skips a per-step VPU cast.
        f_flat = features.reshape(BS, D, HW)
        if f_flat.dtype != self.compute_dtype:
            f_flat = f_flat.astype(self.compute_dtype)
        if D_pad > D:
            f_flat = jnp.pad(f_flat, ((0, 0), (0, D_pad - D), (0, 0)))

        kernel = _make_roi_kernel(H, W, TPP, max_gh, max_gw, self.compute_dtype)

        needed = 2 * d_tile * per_row_bytes + fixed
        vmem_limit = int(min(max(needed + (4 << 20), 32 << 20), (vmem_cap * 3) // 4))

        # Grid: box-tile axis innermost so the features block index (b, d, 0) is
        # constant across it and Pallas skips the feature re-DMA; Mt is rebuilt
        # every step (cheap vs. the main matmul).
        # TODO(synk): if v5e profiling shows exposed feature DMA, add
        #             pipeline_mode=pl.Buffered(3) on the features BlockSpec.
        out = pl.pallas_call(
            kernel,
            out_shape=jax.ShapeDtypeStruct((BS, NT, D_pad, TPP), features.dtype),
            grid=(BS, ND, NT),
            in_specs=[
                pl.BlockSpec((1, 1, 8, TPP), lambda b, d, t: (b, t, 0, 0)),   # params
                pl.BlockSpec((HW, H), lambda b, d, t: (0, 0)),                # R_h (resident)
                pl.BlockSpec((HW, W), lambda b, d, t: (0, 0)),                # R_w (resident)
                pl.BlockSpec((1, d_tile, HW), lambda b, d, t: (b, d, 0)),     # features
            ],
            out_specs=pl.BlockSpec((1, 1, d_tile, TPP), lambda b, d, t: (b, t, d, 0)),
            compiler_params=pltpu.CompilerParams(
                dimension_semantics=("parallel", "parallel", "arbitrary"),
                vmem_limit_bytes=vmem_limit),
        )(params, r_h, r_w, f_flat)

        # [BS, NT, D_pad, O_TILE*PH*PW] -> [BS, O, D, PH, PW]  (tiny; cheap plumbing)
        out = out[:, :, :D]                                         # crop channel padding
        out = out.reshape(BS, NT, D, O_TILE, PH, PW)
        out = jnp.transpose(out, (0, 1, 3, 2, 4, 5)).reshape(BS, O_pad, D, PH, PW)
        return out[:, :O]


def roi_align_reference(features, boxes, output_size, spatial_scale,
                        sampling_ratio=-1, aligned=True):
    """Direct port of torchvision roi_align CPU semantics (per-batch boxes)."""
    BS, D, H, W = features.shape
    O = boxes.shape[1]
    PH, PW = output_size
    out = np.zeros((BS, O, D, PH, PW), dtype=np.float64)
    offset = 0.5 if aligned else 0.0

    def bilinear(fmap, y, x):
        if y < -1.0 or y > H or x < -1.0 or x > W:
            return np.zeros(D, dtype=np.float64)
        y = max(y, 0.0)
        x = max(x, 0.0)
        y_low = int(y)
        x_low = int(x)
        if y_low >= H - 1:
            y_low = y_high = H - 1
            y = float(y_low)
        else:
            y_high = y_low + 1
        if x_low >= W - 1:
            x_low = x_high = W - 1
            x = float(x_low)
        else:
            x_high = x_low + 1
        ly, lx = y - y_low, x - x_low
        hy, hx = 1.0 - ly, 1.0 - lx
        return (hy * hx * fmap[:, y_low, x_low] + hy * lx * fmap[:, y_low, x_high]
                + ly * hx * fmap[:, y_high, x_low] + ly * lx * fmap[:, y_high, x_high])

    for b in range(BS):
        fmap = features[b].astype(np.float64)
        for o in range(O):
            x1, y1, x2, y2 = [float(v) for v in boxes[b, o]]
            rsw = x1 * spatial_scale - offset
            rsh = y1 * spatial_scale - offset
            rew = x2 * spatial_scale - offset
            reh = y2 * spatial_scale - offset
            rw, rh = rew - rsw, reh - rsh
            if not aligned:
                rw, rh = max(rw, 1.0), max(rh, 1.0)
            bh, bw = rh / PH, rw / PW
            gh = sampling_ratio if sampling_ratio > 0 else int(math.ceil(rh / PH))
            gw = sampling_ratio if sampling_ratio > 0 else int(math.ceil(rw / PW))
            count = max(gh * gw, 1)
            for ph in range(PH):
                for pw_ in range(PW):
                    acc = np.zeros(D, dtype=np.float64)
                    for iy in range(gh):
                        y = rsh + ph * bh + (iy + 0.5) * bh / gh
                        for ix in range(gw):
                            x = rsw + pw_ * bw + (ix + 0.5) * bw / gw
                            acc += bilinear(fmap, y, x)
                    out[b, o, :, ph, pw_] = acc / count
    return out.astype(np.float32)


if __name__ == "__main__":
    BS, O, D, H, W = 2, 3, 32, 12, 12
    VIDEO_HW = (96.0, 96.0)
    OUT_SIZE = (4, 4)

    key = jax.random.PRNGKey(0)
    kf, kb = jax.random.split(key)
    features = jax.random.normal(kf, (BS, D, H, W), dtype=jnp.float32)

    raw = jax.random.uniform(kb, (BS, O, 4), dtype=jnp.float32,
                             minval=0.0, maxval=float(VIDEO_HW[0]))
    xa, ya, xb, yb = raw[..., 0], raw[..., 1], raw[..., 2], raw[..., 3]
    boxes = jnp.stack([jnp.minimum(xa, xb), jnp.minimum(ya, yb),
                       jnp.maximum(xa, xb), jnp.maximum(ya, yb)], axis=-1)

    ref = roi_align_reference(np.asarray(features), np.asarray(boxes),
                              OUT_SIZE, H / VIDEO_HW[0])

    # Accuracy mode (f32 contraction) — matches torchvision tightly.
    crops_f32 = ObjectsCropsPallas(VIDEO_HW, OUT_SIZE, compute_dtype=jnp.float32)
    out_f32 = jax.block_until_ready(crops_f32(features, boxes))
    assert out_f32.shape == (BS, O, D, OUT_SIZE[0], OUT_SIZE[1]), out_f32.shape
    np.testing.assert_allclose(np.asarray(out_f32), ref, rtol=2e-4, atol=2e-4)

    # Default fast mode (bf16 feature streaming + MXU contraction, f32 accumulate).
    crops_bf16 = ObjectsCropsPallas(VIDEO_HW, OUT_SIZE)
    out_bf16 = jax.block_until_ready(crops_bf16(features, boxes))
    assert out_bf16.shape == (BS, O, D, OUT_SIZE[0], OUT_SIZE[1]), out_bf16.shape
    np.testing.assert_allclose(np.asarray(out_bf16), ref, rtol=5e-2, atol=5e-2)

    print("KERNEL_OK")
</pallas_src>

<mosaic_0001>
module attributes {stable_mosaic.version = 11 : i64} {
  func.func @kernel(%arg0: i32, %arg1: i32, %arg2: i32, %arg3: memref<1x1x8x256xf32, #tpu.memory_space<vmem>>, %arg4: memref<144x12xf32, #tpu.memory_space<vmem>>, %arg5: memref<144x12xf32, #tpu.memory_space<vmem>>, %arg6: memref<1x32x144xf32, #tpu.memory_space<vmem>>, %arg7: memref<1x1x32x256xf32, #tpu.memory_space<vmem>>) attributes {dimension_semantics = [#tpu.dimension_semantics<parallel>, #tpu.dimension_semantics<parallel>, #tpu.dimension_semantics<arbitrary>], iteration_bounds = array<i64: 2, 1, 1>, scalar_prefetch = 0 : i64, scratch_operands = 0 : i64, tpu.core_type = #tpu.core_type<tc>, window_params = [{transform_indices = @transform_0, window_bounds = array<i64: 1, 1, 8, 256>}, {pipeline_mode = #tpu.pipeline_mode<synchronous>, transform_indices = @transform_1, window_bounds = array<i64: 144, 12>}, {pipeline_mode = #tpu.pipeline_mode<synchronous>, transform_indices = @transform_2, window_bounds = array<i64: 144, 12>}, {transform_indices = @transform_3, window_bounds = array<i64: 1, 32, 144>}, {transform_indices = @transform_4, window_bounds = array<i64: 1, 1, 32, 256>}]} {
    %c0 = arith.constant 0 : index
    %c0_0 = arith.constant 0 : index
    %c0_1 = arith.constant 0 : index
    %c0_2 = arith.constant 0 : index
    %0 = vector.load %arg3[%c0, %c0_0, %c0_1, %c0_2] : memref<1x1x8x256xf32, #tpu.memory_space<vmem>>, vector<1x1x8x256xf32>
    %1 = vector.shape_cast %0 : vector<1x1x8x256xf32> to vector<8x256xf32>
    %2 = vector.extract_strided_slice %1 {offsets = [0, 0], sizes = [1, 256], strides = [1, 1]} : vector<8x256xf32> to vector<1x256xf32>
    %3 = vector.extract_strided_slice %1 {offsets = [1, 0], sizes = [1, 256], strides = [1, 1]} : vector<8x256xf32> to vector<1x256xf32>
    %4 = vector.extract_strided_slice %1 {offsets = [2, 0], sizes = [1, 256], strides = [1, 1]} : vector<8x256xf32> to vector<1x256xf32>
    %5 = vector.extract_strided_slice %1 {offsets = [3, 0], sizes = [1, 256], strides = [1, 1]} : vector<8x256xf32> to vector<1x256xf32>
    %6 = vector.extract_strided_slice %1 {offsets = [4, 0], sizes = [1, 256], strides = [1, 1]} : vector<8x256xf32> to vector<1x256xf32>
    %7 = vector.extract_strided_slice %1 {offsets = [5, 0], sizes = [1, 256], strides = [1, 1]} : vector<8x256xf32> to vector<1x256xf32>
    %8 = vector.extract_strided_slice %1 {offsets = [6, 0], sizes = [1, 256], strides = [1, 1]} : vector<8x256xf32> to vector<1x256xf32>
    %9 = tpu.iota {dimensions = array<i32: 0>} : vector<12x256xi32>
    %10 = arith.sitofp %9 : vector<12x256xi32> to vector<12x256xf32>
    %11 = tpu.iota {dimensions = array<i32: 0>} : vector<12x256xi32>
    %12 = arith.sitofp %11 : vector<12x256xi32> to vector<12x256xf32>
    %cst = arith.constant 0.000000e+00 : f32
    %13 = vector.broadcast %cst : f32 to vector<12x256xf32>
    %cst_3 = arith.constant 5.000000e-01 : f32
    %14 = vector.broadcast %cst_3 : f32 to vector<1x256xf32>
    %15 = arith.mulf %14, %3 : vector<1x256xf32>
    %16 = arith.addf %2, %15 : vector<1x256xf32>
    %cst_4 = arith.constant 0.000000e+00 : f32
    %17 = vector.broadcast %cst_4 : f32 to vector<1x256xf32>
    %18 = arith.cmpf ogt, %4, %17 : vector<1x256xf32>
    %cst_5 = arith.constant -1.000000e+00 : f32
    %19 = vector.broadcast %cst_5 : f32 to vector<1x256xf32>
    %20 = arith.cmpf oge, %16, %19 : vector<1x256xf32>
    %21 = arith.andi %18, %20 : vector<1x256xi1>
    %cst_6 = arith.constant 1.200000e+01 : f32
    %22 = vector.broadcast %cst_6 : f32 to vector<1x256xf32>
    %23 = arith.cmpf ole, %16, %22 : vector<1x256xf32>
    %24 = arith.andi %21, %23 : vector<1x256xi1>
    %cst_7 = arith.constant 0.000000e+00 : f32
    %cst_8 = arith.constant 1.100000e+01 : f32
    %25 = vector.broadcast %cst_7 : f32 to vector<1x256xf32>
    %26 = arith.maximumf %25, %16 : vector<1x256xf32>
    %27 = vector.broadcast %cst_8 : f32 to vector<1x256xf32>
    %28 = arith.minimumf %27, %26 : vector<1x256xf32>
    %29 = vector.broadcast %28 : vector<1x256xf32> to vector<12x256xf32>
    %30 = arith.subf %29, %10 : vector<12x256xf32>
    %31 = math.absf %30 : vector<12x256xf32>
    %cst_9 = arith.constant 1.000000e+00 : f32
    %32 = vector.broadcast %cst_9 : f32 to vector<12x256xf32>
    %33 = arith.subf %32, %31 : vector<12x256xf32>
    %cst_10 = arith.constant 0.000000e+00 : f32
    %34 = vector.broadcast %cst_10 : f32 to vector<12x256xf32>
    %35 = arith.maximumf %34, %33 : vector<12x256xf32>
    %cst_11 = arith.constant 0.000000e+00 : f32
    %36 = vector.shape_cast %24 : vector<1x256xi1> to vector<1x256xi1>
    %37 = vector.broadcast %36 : vector<1x256xi1> to vector<12x256xi1>
    %38 = vector.broadcast %cst_11 : f32 to vector<12x256xf32>
    %39 = arith.select %37, %35, %38 : vector<12x256xi1>, vector<12x256xf32>
    %40 = arith.addf %13, %39 : vector<12x256xf32>
    %cst_12 = arith.constant 1.500000e+00 : f32
    %41 = vector.broadcast %cst_12 : f32 to vector<1x256xf32>
    %42 = arith.mulf %41, %3 : vector<1x256xf32>
    %43 = arith.addf %2, %42 : vector<1x256xf32>
    %cst_13 = arith.constant 1.000000e+00 : f32
    %44 = vector.broadcast %cst_13 : f32 to vector<1x256xf32>
    %45 = arith.cmpf ogt, %4, %44 : vector<1x256xf32>
    %cst_14 = arith.constant -1.000000e+00 : f32
    %46 = vector.broadcast %cst_14 : f32 to vector<1x256xf32>
    %47 = arith.cmpf oge, %43, %46 : vector<1x256xf32>
    %48 = arith.andi %45, %47 : vector<1x256xi1>
    %cst_15 = arith.constant 1.200000e+01 : f32
    %49 = vector.broadcast %cst_15 : f32 to vector<1x256xf32>
    %50 = arith.cmpf ole, %43, %49 : vector<1x256xf32>
    %51 = arith.andi %48, %50 : vector<1x256xi1>
    %cst_16 = arith.constant 0.000000e+00 : f32
    %cst_17 = arith.constant 1.100000e+01 : f32
    %52 = vector.broadcast %cst_16 : f32 to vector<1x256xf32>
    %53 = arith.maximumf %52, %43 : vector<1x256xf32>
    %54 = vector.broadcast %cst_17 : f32 to vector<1x256xf32>
    %55 = arith.minimumf %54, %53 : vector<1x256xf32>
    %56 = vector.broadcast %55 : vector<1x256xf32> to vector<12x256xf32>
    %57 = arith.subf %56, %10 : vector<12x256xf32>
    %58 = math.absf %57 : vector<12x256xf32>
    %cst_18 = arith.constant 1.000000e+00 : f32
    %59 = vector.broadcast %cst_18 : f32 to vector<12x256xf32>
    %60 = arith.subf %59, %58 : vector<12x256xf32>
    %cst_19 = arith.constant 0.000000e+00 : f32
    %61 = vector.broadcast %cst_19 : f32 to vector<12x256xf32>
    %62 = arith.maximumf %61, %60 : vector<12x256xf32>
    %cst_20 = arith.constant 0.000000e+00 : f32
    %63 = vector.shape_cast %51 : vector<1x256xi1> to vector<1x256xi1>
    %64 = vector.broadcast %63 : vector<1x256xi1> to vector<12x256xi1>
    %65 = vector.broadcast %cst_20 : f32 to vector<12x256xf32>
    %66 = arith.select %64, %62, %65 : vector<12x256xi1>, vector<12x256xf32>
    %67 = arith.addf %40, %66 : vector<12x256xf32>
    %cst_21 = arith.constant 2.500000e+00 : f32
    %68 = vector.broadcast %cst_21 : f32 to vector<1x256xf32>
    %69 = arith.mulf %68, %3 : vector<1x256xf32>
    %70 = arith.addf %2, %69 : vector<1x256xf32>
    %cst_22 = arith.constant 2.000000e+00 : f32
    %71 = vector.broadcast %cst_22 : f32 to vector<1x256xf32>
    %72 = arith.cmpf ogt, %4, %71 : vector<1x256xf32>
    %cst_23 = arith.constant -1.000000e+00 : f32
    %73 = vector.broadcast %cst_23 : f32 to vector<1x256xf32>
    %74 = arith.cmpf oge, %70, %73 : vector<1x256xf32>
    %75 = arith.andi %72, %74 : vector<1x256xi1>
    %cst_24 = arith.constant 1.200000e+01 : f32
    %76 = vector.broadcast %cst_24 : f32 to vector<1x256xf32>
    %77 = arith.cmpf ole, %70, %76 : vector<1x256xf32>
    %78 = arith.andi %75, %77 : vector<1x256xi1>
    %cst_25 = arith.constant 0.000000e+00 : f32
    %cst_26 = arith.constant 1.100000e+01 : f32
    %79 = vector.broadcast %cst_25 : f32 to vector<1x256xf32>
    %80 = arith.maximumf %79, %70 : vector<1x256xf32>
    %81 = vector.broadcast %cst_26 : f32 to vector<1x256xf32>
    %82 = arith.minimumf %81, %80 : vector<1x256xf32>
    %83 = vector.broadcast %82 : vector<1x256xf32> to vector<12x256xf32>
    %84 = arith.subf %83, %10 : vector<12x256xf32>
    %85 = math.absf %84 : vector<12x256xf32>
    %cst_27 = arith.constant 1.000000e+00 : f32
    %86 = vector.broadcast %cst_27 : f32 to vector<12x256xf32>
    %87 = arith.subf %86, %85 : vector<12x256xf32>
    %cst_28 = arith.constant 0.000000e+00 : f32
    %88 = vector.broadcast %cst_28 : f32 to vector<12x256xf32>
    %89 = arith.maximumf %88, %87 : vector<12x256xf32>
    %cst_29 = arith.constant 0.000000e+00 : f32
    %90 = vector.shape_cast %78 : vector<1x256xi1> to vector<1x256xi1>
    %91 = vector.broadcast %90 : vector<1x256xi1> to vector<12x256xi1>
    %92 = vector.broadcast %cst_29 : f32 to vector<12x256xf32>
    %93 = arith.select %91, %89, %92 : vector<12x256xi1>, vector<12x256xf32>
    %94 = arith.addf %67, %93 : vector<12x256xf32>
    %cst_30 = arith.constant 0.000000e+00 : f32
    %95 = vector.broadcast %cst_30 : f32 to vector<12x256xf32>
    %cst_31 = arith.constant 5.000000e-01 : f32
    %96 = vector.broadcast %cst_31 : f32 to vector<1x256xf32>
    %97 = arith.mulf %96, %6 : vector<1x256xf32>
    %98 = arith.addf %5, %97 : vector<1x256xf32>
    %cst_32 = arith.constant 0.000000e+00 : f32
    %99 = vector.broadcast %cst_32 : f32 to vector<1x256xf32>
    %100 = arith.cmpf ogt, %7, %99 : vector<1x256xf32>
    %cst_33 = arith.constant -1.000000e+00 : f32
    %101 = vector.broadcast %cst_33 : f32 to vector<1x256xf32>
    %102 = arith.cmpf oge, %98, %101 : vector<1x256xf32>
    %103 = arith.andi %100, %102 : vector<1x256xi1>
    %cst_34 = arith.constant 1.200000e+01 : f32
    %104 = vector.broadcast %cst_34 : f32 to vector<1x256xf32>
    %105 = arith.cmpf ole, %98, %104 : vector<1x256xf32>
    %106 = arith.andi %103, %105 : vector<1x256xi1>
    %cst_35 = arith.constant 0.000000e+00 : f32
    %cst_36 = arith.constant 1.100000e+01 : f32
    %107 = vector.broadcast %cst_35 : f32 to vector<1x256xf32>
    %108 = arith.maximumf %107, %98 : vector<1x256xf32>
    %109 = vector.broadcast %cst_36 : f32 to vector<1x256xf32>
    %110 = arith.minimumf %109, %108 : vector<1x256xf32>
    %111 = vector.broadcast %110 : vector<1x256xf32> to vector<12x256xf32>
    %112 = arith.subf %111, %12 : vector<12x256xf32>
    %113 = math.absf %112 : vector<12x256xf32>
    %cst_37 = arith.constant 1.000000e+00 : f32
    %114 = vector.broadcast %cst_37 : f32 to vector<12x256xf32>
    %115 = arith.subf %114, %113 : vector<12x256xf32>
    %cst_38 = arith.constant 0.000000e+00 : f32
    %116 = vector.broadcast %cst_38 : f32 to vector<12x256xf32>
    %117 = arith.maximumf %116, %115 : vector<12x256xf32>
    %cst_39 = arith.constant 0.000000e+00 : f32
    %118 = vector.shape_cast %106 : vector<1x256xi1> to vector<1x256xi1>
    %119 = vector.broadcast %118 : vector<1x256xi1> to vector<12x256xi1>
    %120 = vector.broadcast %cst_39 : f32 to vector<12x256xf32>
    %121 = arith.select %119, %117, %120 : vector<12x256xi1>, vector<12x256xf32>
    %122 = arith.addf %95, %121 : vector<12x256xf32>
    %cst_40 = arith.constant 1.500000e+00 : f32
    %123 = vector.broadcast %cst_40 : f32 to vector<1x256xf32>
    %124 = arith.mulf %123, %6 : vector<1x256xf32>
    %125 = arith.addf %5, %124 : vector<1x256xf32>
    %cst_41 = arith.constant 1.000000e+00 : f32
    %126 = vector.broadcast %cst_41 : f32 to vector<1x256xf32>
    %127 = arith.cmpf ogt, %7, %126 : vector<1x256xf32>
    %cst_42 = arith.constant -1.000000e+00 : f32
    %128 = vector.broadcast %cst_42 : f32 to vector<1x256xf32>
    %129 = arith.cmpf oge, %125, %128 : vector<1x256xf32>
    %130 = arith.andi %127, %129 : vector<1x256xi1>
    %cst_43 = arith.constant 1.200000e+01 : f32
    %131 = vector.broadcast %cst_43 : f32 to vector<1x256xf32>
    %132 = arith.cmpf ole, %125, %131 : vector<1x256xf32>
    %133 = arith.andi %130, %132 : vector<1x256xi1>
    %cst_44 = arith.constant 0.000000e+00 : f32
    %cst_45 = arith.constant 1.100000e+01 : f32
    %134 = vector.broadcast %cst_44 : f32 to vector<1x256xf32>
    %135 = arith.maximumf %134, %125 : vector<1x256xf32>
    %136 = vector.broadcast %cst_45 : f32 to vector<1x256xf32>
    %137 = arith.minimumf %136, %135 : vector<1x256xf32>
    %138 = vector.broadcast %137 : vector<1x256xf32> to vector<12x256xf32>
    %139 = arith.subf %138, %12 : vector<12x256xf32>
    %140 = math.absf %139 : vector<12x256xf32>
    %cst_46 = arith.constant 1.000000e+00 : f32
    %141 = vector.broadcast %cst_46 : f32 to vector<12x256xf32>
    %142 = arith.subf %141, %140 : vector<12x256xf32>
    %cst_47 = arith.constant 0.000000e+00 : f32
    %143 = vector.broadcast %cst_47 : f32 to vector<12x256xf32>
    %144 = arith.maximumf %143, %142 : vector<12x256xf32>
    %cst_48 = arith.constant 0.000000e+00 : f32
    %145 = vector.shape_cast %133 : vector<1x256xi1> to vector<1x256xi1>
    %146 = vector.broadcast %145 : vector<1x256xi1> to vector<12x256xi1>
    %147 = vector.broadcast %cst_48 : f32 to vector<12x256xf32>
    %148 = arith.select %146, %144, %147 : vector<12x256xi1>, vector<12x256xf32>
    %149 = arith.addf %122, %148 : vector<12x256xf32>
    %cst_49 = arith.constant 2.500000e+00 : f32
    %150 = vector.broadcast %cst_49 : f32 to vector<1x256xf32>
    %151 = arith.mulf %150, %6 : vector<1x256xf32>
    %152 = arith.addf %5, %151 : vector<1x256xf32>
    %cst_50 = arith.constant 2.000000e+00 : f32
    %153 = vector.broadcast %cst_50 : f32 to vector<1x256xf32>
    %154 = arith.cmpf ogt, %7, %153 : vector<1x256xf32>
    %cst_51 = arith.constant -1.000000e+00 : f32
    %155 = vector.broadcast %cst_51 : f32 to vector<1x256xf32>
    %156 = arith.cmpf oge, %152, %155 : vector<1x256xf32>
    %157 = arith.andi %154, %156 : vector<1x256xi1>
    %cst_52 = arith.constant 1.200000e+01 : f32
    %158 = vector.broadcast %cst_52 : f32 to vector<1x256xf32>
    %159 = arith.cmpf ole, %152, %158 : vector<1x256xf32>
    %160 = arith.andi %157, %159 : vector<1x256xi1>
    %cst_53 = arith.constant 0.000000e+00 : f32
    %cst_54 = arith.constant 1.100000e+01 : f32
    %161 = vector.broadcast %cst_53 : f32 to vector<1x256xf32>
    %162 = arith.maximumf %161, %152 : vector<1x256xf32>
    %163 = vector.broadcast %cst_54 : f32 to vector<1x256xf32>
    %164 = arith.minimumf %163, %162 : vector<1x256xf32>
    %165 = vector.broadcast %164 : vector<1x256xf32> to vector<12x256xf32>
    %166 = arith.subf %165, %12 : vector<12x256xf32>
    %167 = math.absf %166 : vector<12x256xf32>
    %cst_55 = arith.constant 1.000000e+00 : f32
    %168 = vector.broadcast %cst_55 : f32 to vector<12x256xf32>
    %169 = arith.subf %168, %167 : vector<12x256xf32>
    %cst_56 = arith.constant 0.000000e+00 : f32
    %170 = vector.broadcast %cst_56 : f32 to vector<12x256xf32>
    %171 = arith.maximumf %170, %169 : vector<12x256xf32>
    %cst_57 = arith.constant 0.000000e+00 : f32
    %172 = vector.shape_cast %160 : vector<1x256xi1> to vector<1x256xi1>
    %173 = vector.broadcast %172 : vector<1x256xi1> to vector<12x256xi1>
    %174 = vector.broadcast %cst_57 : f32 to vector<12x256xf32>
    %175 = arith.select %173, %171, %174 : vector<12x256xi1>, vector<12x256xf32>
    %176 = arith.addf %149, %175 : vector<12x256xf32>
    %177 = vector.broadcast %8 : vector<1x256xf32> to vector<12x256xf32>
    %178 = arith.mulf %94, %177 : vector<12x256xf32>
    %c0_58 = arith.constant 0 : index
    %c0_59 = arith.constant 0 : index
    %179 = vector.load %arg4[%c0_58, %c0_59] : memref<144x12xf32, #tpu.memory_space<vmem>>, vector<144x12xf32>
    %cst_60 = arith.constant dense<0.000000e+00> : vector<144x256xf32>
    %180 = tpu.matmul %179, %178, %cst_60 {dimension_numbers = #tpu.dot_dimension_numbers<[1], [0], [0], [1], [0, 0, 1, 1], [], []>} : vector<144x12xf32>, vector<12x256xf32>, vector<144x256xf32> -> vector<144x256xf32>
    %c0_61 = arith.constant 0 : index
    %c0_62 = arith.constant 0 : index
    %181 = vector.load %arg5[%c0_61, %c0_62] : memref<144x12xf32, #tpu.memory_space<vmem>>, vector<144x12xf32>
    %cst_63 = arith.constant dense<0.000000e+00> : vector<144x256xf32>
    %182 = tpu.matmul %181, %176, %cst_63 {dimension_numbers = #tpu.dot_dimension_numbers<[1], [0], [0], [1], [0, 0, 1, 1], [], []>} : vector<144x12xf32>, vector<12x256xf32>, vector<144x256xf32> -> vector<144x256xf32>
    %183 = arith.mulf %180, %182 : vector<144x256xf32>
    %c0_64 = arith.constant 0 : index
    %c0_65 = arith.constant 0 : index
    %c0_66 = arith.constant 0 : index
    %184 = vector.load %arg6[%c0_64, %c0_65, %c0_66] : memref<1x32x144xf32, #tpu.memory_space<vmem>>, vector<1x32x144xf32>
    %185 = vector.shape_cast %184 : vector<1x32x144xf32> to vector<32x144xf32>
    %cst_67 = arith.constant dense<0.000000e+00> : vector<32x256xf32>
    %186 = tpu.matmul %185, %183, %cst_67 {dimension_numbers = #tpu.dot_dimension_numbers<[1], [0], [0], [1], [0, 0, 1, 1], [], []>} : vector<32x144xf32>, vector<144x256xf32>, vector<32x256xf32> -> vector<32x256xf32>
    %c0_68 = arith.constant 0 : index
    %c0_69 = arith.constant 0 : index
    %c0_70 = arith.constant 0 : index
    %c0_71 = arith.constant 0 : index
    %187 = vector.load %arg7[%c0_68, %c0_69, %c0_70, %c0_71] : memref<1x1x32x256xf32, #tpu.memory_space<vmem>>, vector<1x1x32x256xf32>
    %188 = vector.shape_cast %187 : vector<1x1x32x256xf32> to vector<32x256xf32>
    %189 = vector.shape_cast %186 : vector<32x256xf32> to vector<1x1x32x256xf32>
    tpu.vector_store %arg7[%c0_68, %c0_69, %c0_70, %c0_71], %189 {strides = array<i32>} : memref<1x1x32x256xf32, #tpu.memory_space<vmem>>, vector<1x1x32x256xf32>,
    return
  }
  func.func @transform_0(%arg0: i32, %arg1: i32, %arg2: i32) -> (i32, i32, i32, i32) {
    %c0_i32 = arith.constant 0 : i32
    %c0_i32_0 = arith.constant 0 : i32
    %c0_i32_1 = arith.constant 0 : i32
    return %arg0, %arg2, %c0_i32, %c0_i32_0 : i32, i32, i32, i32
  }
  func.func @transform_1(%arg0: i32, %arg1: i32, %arg2: i32) -> (i32, i32) {
    %c0_i32 = arith.constant 0 : i32
    %c0_i32_0 = arith.constant 0 : i32
    %c0_i32_1 = arith.constant 0 : i32
    return %c0_i32, %c0_i32_0 : i32, i32
  }
  func.func @transform_2(%arg0: i32, %arg1: i32, %arg2: i32) -> (i32, i32) {
    %c0_i32 = arith.constant 0 : i32
    %c0_i32_0 = arith.constant 0 : i32
    %c0_i32_1 = arith.constant 0 : i32
    return %c0_i32, %c0_i32_0 : i32, i32
  }
  func.func @transform_3(%arg0: i32, %arg1: i32, %arg2: i32) -> (i32, i32, i32) {
    %c0_i32 = arith.constant 0 : i32
    %c0_i32_0 = arith.constant 0 : i32
    return %arg0, %arg1, %c0_i32 : i32, i32, i32
  }
  func.func @transform_4(%arg0: i32, %arg1: i32, %arg2: i32) -> (i32, i32, i32, i32) {
    %c0_i32 = arith.constant 0 : i32
    %c0_i32_0 = arith.constant 0 : i32
    return %arg0, %arg2, %arg1, %c0_i32 : i32, i32, i32, i32
  }
}

</mosaic_0001>

<bundles_post_ra>
// kernel: tpu_custom_call.1
= control target key start
LH: loop header
LB: loop body
LE: loop exit
PB: predicated region body
PF: predicated region fallthrough
CT: control target
= control target key end

     0   :  { %9 = vsyncpa [#allocation3], 0  ;;  %s2386_s0 = inlined_call_operand.vmem [shape: f32[2,1,8,256], index: 0, kind: input, shape index: {}]   ;;  %s2387_s1 = inlined_call_operand.vmem [shape: f32[144,12], index: 1, kind: input, shape index: {}]   ;;  %s2388_s2 = inlined_call_operand.vmem [shape: f32[144,12], index: 2, kind: input, shape index: {}]   ;;  %s2389_s3 = inlined_call_operand.vmem [shape: f32[2,32,144], index: 3, kind: input, shape index: {}]   ;;  %s2390_s4 = inlined_call_operand.hbm [shape: f32[2,1,32,256], index: 4, kind: output, shape index: {}]  }
   0x1   :  { %11 = vsyncpa [#allocation3 + $0x1], 0  ;;  %s1676_s15 = smov 0   ;;  %s1678_s16 = smov 0  }
   0x2   :  { %s1680_s17 = smov 0   ;;  %s1682_s18 = smov 0  }
   0x3   :  { %s1684_s19 = smov 0   ;;  %s1686_s20 = smov 0  }
   0x4 LB: > { %s1443_s21 = sadd.s32 4294967295, %s1644_s20   ;;  %s1444_s22 = sadd.s32 4294967294, %s1644_s20   ;;  %s1644_s20 = sphi %s1686_s20, %s17_s20   ;;  %s1640_s19 = sphi %s1684_s19, %s2433_s19   ;;  %s1636_s18 = sphi %s1682_s18, %s2432_s18   ;;  %s1632_s17 = sphi %s1680_s17, %s2431_s17   ;;  %s1628_s16 = sphi %s1678_s16, %s2430_s16   ;;  %s1624_s15 = sphi %s1676_s15, %s2429_s15  }
   0x5   : > { %s36_s23 = sadd.s32 1, %s1640_s19  ;;  %s145_s24 = sadd.s32 1, %s1632_s17 }
   0x6   : > { %p38_p0 = scmp.ge.s32.totalorder %s36_s23, 2  ;;  %p155_p1 = scmp.ne.s32.totalorder %s1632_s17, %s1628_s16 }
   0x7   : > { %p156_p2 = scmp.eq.s32.totalorder %s1443_s21, 1  ;;  %p161_p3 = scmp.ne.s32.totalorder %s1628_s16, %s1624_s15 }
   0x8   : > { %s2435_s23 = smov (%p38_p0, %s36_s23), 0  ;;  %p162_p5 = scmp.eq.s32.totalorder %s1444_s22, 1 }
   0x9   : > { %p1716_p4 = por %p156_p2, %p155_p1  ;;  %s138_s26 = ssub.s32 %s1640_s19, %s2435_s23 }
   0xa   : > { %p1447_p6 = scmp.ge.s32.totalorder %s1644_s20, 1  ;;  %p143_p7 = scmp.eq.s32.totalorder %s138_s26, 0 }
   0xb   : > { %p1723_p8 = por %p162_p5, %p161_p3  ;;  %p212_p9 = scmp.lt.s32.totalorder %s1644_s20, 3 }
   0xc   : > { %s1729_s28 = scalar_select %p143_p7, %s1632_s17, %s145_s24  }
   0xd   : > { %p213_p10 = pnand %p1447_p6, %p212_p9 }
   0xf   : > { %216 = sbr.rel (%p213_p10) target bundleno = 617 (0x269), region = 36 }
  0x14   : > { %p252_p11 = scmp.lt.s32.totalorder %s1636_s18, 1  ;;  %v275_v0 = vlaneseq  ;;  %v1646_v1 = vmov 0.0   ;;  %v1647_v29 = vmov 0   ;;  %s1504_s12 = sshll.u32 %s1636_s18, 10 }
  0x15   : > { %898 = vmatprep.mubr.f32.mxu1 %v1646_v1  ;;  %802 = vmatprep.mubr.f32.mxu0 %v1646_v1  ;;  %s2339_s21 = scalar_lea.hbm %s2390_s4, %s1504_s12 }
  0x16   : > { %s1735_s29 = scalar_select %p252_p11, %s1636_s18, 1  ;;  %v1737_v2 = vshrl.u32 %v275_v0, 7 }
  0x17   : > { %s1648_s18 = smov [#allocation2]  }
  0x18   : > { %s1502_s30 = sshll.u32 %s1735_s29, 4  ;;  %v277_v5 = vadd.s32 8, %v1737_v2  ;;  %v1749_v6 = vcvt.s32.f32 %v1737_v2  ;;  %v1753_v8 = vsub.s32 0, %v1737_v2  ;;  %v648_v10 = vsub.s32 6, %v1737_v2  ;;  %s1503_s5 = sshll.u32 %s1735_s29, 6 }
  0x19   : > { %s260_s7 = scalar_lea.vmem %s2386_s0, %s1502_s30  ;;  %v1758_v11 = vsub.s32 2, %v1737_v2  ;;  %v1762_v13 = vsub.s32 5, %v1737_v2  ;;  %v1771_v18 = vsub.s32 3, %v1737_v2  ;;  %s2240_s8 = scalar_lea.vmem %s2389_s3, %s1503_s5 }
  0x1a   : > { %v1743_v3 = vld [vmem:[%s260_s7] sm:$0xff]  ;;  %v1745_v4 = vld [vmem:[%s260_s7 + $0x8] sm:$0xff]  ;;  %v1773_v19 = vcvt.s32.f32 %v277_v5  ;;  %s249_s29 = sand.u32 1, %s1628_s16   ;;  %s1572_s26 = sshll.u32 %s1648_s18, 4  ;;  %s1573_s26 = int_to_ptr.vmem [resolvable:$false] %s1572_s26 }
  0x1b   : > { %v281_v7 = vmul.f32 0.5, %v1745_v4  ;;  %v361_v9 = vmul.f32 1.5, %v1745_v4  ;;  %v441_v12 = vmul.f32 2.5, %v1745_v4  ;;  %v1765_v14 = vmul.f32 0.5, %v1743_v3  ;;  %s1448_s9 = sshll.u32 %s249_s29, 6  ;;  %s2341_s22 = scalar_lea.sflag [#allocation3], %s249_s29 }
  0x1c   : > { %v1768_v17 = vmul.f32 1.5, %v1743_v3  ;;  %vm291_vm0 = vcmp.gt.f32.partialorder %v1745_v4, 0.0  ;;  %vm371_vm1 = vcmp.gt.f32.partialorder %v1745_v4, 1.0  ;;  %vm451_vm2 = vcmp.gt.f32.partialorder %v1745_v4, 2.0  ;;  %s251_s10 = scalar_lea.vmem [#allocation2], %s1448_s9  ;;  %s1574_s30 = scalar_lea.vmem %s1573_s26, 2048 }
  0x1d   : > { %v285_v15 = vrot.slane %v281_v7, 1  ;;  %v365_v16 = vrot.slane %v361_v9, 1  ;;  %v445_v20 = vrot.slane %v441_v12, 1  ;;  %v1783_v23 = vrot.slane %v1745_v4, %v648_v10  ;;  %s1335_s11 = sshll.u32 %s251_s10, 4  ;;  %s2334_s11 = int_to_ptr.vmem [resolvable:$true] %s1335_s11 }
  0x1e   : > { %v284_v25 = vrot.slane %v1765_v14, 1  ;;  %v364_v26 = vrot.slane %v1768_v17, 1  ;;  %v1789_v27 = vmul.f32 2.5, %v1743_v3  ;;  %s1568_s24 = scalar_lea.vmem %s2334_s11, 1024  ;;  %p1575_p1 = scmp.lt.s32.totalorder %s2334_s11, %s1573_s26 }
  0x1f   : > { %v289_v21 = vadd.f32 %v285_v15, %v1745_v4  ;;  %v369_v22 = vadd.f32 %v365_v16, %v1745_v4  ;;  %v449_v24 = vadd.f32 %v445_v20, %v1745_v4  ;;  %p1569_p12 = scmp.ne.s32.totalorder %s2334_s11, %s1568_s24  ;;  %p1576_p2 = scmp.lt.s32.totalorder %s1574_s30, %s1568_s24 }
  0x20   : > { %v288_v9 = vadd.f32 %v284_v25, %v1743_v3  ;;  %v444_v16 = vrot.slane %v1789_v27, 1 }
  0x21   : > { %vm293_vm3 = vcmp.ge.f32.partialorder %v289_v21, -1.0  ;;  %vm303_vm4 = vcmp.le.f32.partialorder %v289_v21, 12.0  ;;  %v313_v28 = vmax.f32 %v289_v21, 0.0  ;;  %vm373_vm5 = vcmp.ge.f32.partialorder %v369_v22, -1.0  ;;  %p1570_p13 = pnand %p1569_p12, %p1716_p4  ;;  %p1577_p3 = por %p1576_p2, %p1575_p1 }
  0x22   : > { %v295_v30 = vsel %vm293_vm3, 1, %v1647_v29  ;;  %v305_v31 = vsel %vm303_vm4, 1, %v1647_v29  ;;  %v375_v32 = vsel %vm373_vm5, 1, %v1647_v29  ;;  %vm383_vm6 = vcmp.le.f32.partialorder %v369_v22, 12.0 }
  0x23   : > { %v297_v33 = vrot.slane %v295_v30, 6  ;;  %v307_v34 = vrot.slane %v305_v31, 6  ;;  %v1794_v35 = vmin.f32 %v313_v28, 11.0  ;;  %v377_v36 = vrot.slane %v375_v32, 6  ;;  %p1571_p0 = pneg %p1570_p13 }
  0x24   : > { %v385_v37 = vsel %vm383_vm6, 1, %v1647_v29  ;;  %v393_v38 = vmax.f32 %v369_v22, 0.0  ;;  %vm453_vm7 = vcmp.ge.f32.partialorder %v449_v24, -1.0  ;;  %vm463_vm8 = vcmp.le.f32.partialorder %v449_v24, 12.0 }
  0x25   : > { %vm299_vm9 = vcmp.ne.s32.totalorder %v297_v33, 0  ;;  %vm309_vm10 = vcmp.ne.s32.totalorder %v307_v34, 0  ;;  %v323_v39 = vrot.slane %v1794_v35, %v1753_v8  ;;  %vm379_vm11 = vcmp.ne.s32.totalorder %v377_v36, 0  ;;  %p1578_p5 = pnand %p1577_p3, %p1571_p0 }
  0x26   : > { %vm301_vm12 = vmand %vm291_vm0, %vm299_vm9  ;;  %v387_v40 = vrot.slane %v385_v37, 6  ;;  %v1801_v41 = vmin.f32 %v393_v38, 11.0  ;;  %v455_v42 = vsel %vm453_vm7, 1, %v1647_v29  ;;  %v465_v43 = vsel %vm463_vm8, 1, %v1647_v29 }
  0x27   : > { %vm311_vm13 = vmand %vm301_vm12, %vm309_vm10  ;;  %v325_v44 = vsub.f32 %v323_v39, %v1749_v6  ;;  %v327_v45 = vsub.f32 %v323_v39, %v1773_v19  ;;  %v457_v46 = vrot.slane %v455_v42, 6  ;;  %v467_v47 = vrot.slane %v465_v43, 6 }
  0x28   : > { %v1808_v48 = vsel %vm311_vm13, 1, %v1647_v29  ;;  %vm381_vm14 = vmand %vm371_vm1, %vm379_vm11  ;;  %vm389_vm15 = vcmp.ne.s32.totalorder %v387_v40, 0  ;;  %v403_v49 = vrot.slane %v1801_v41, %v1753_v8  ;;  %v473_v50 = vmax.f32 %v449_v24, 0.0 }
  0x29   : > { %v329_v51 = vand.u32 2147483647, %v325_v44  ;;  %v331_v52 = vand.u32 2147483647, %v327_v45  ;;  %v349_v53 = vrot.slane %v1808_v48, %v1758_v11  ;;  %vm391_vm0 = vmand %vm381_vm14, %vm389_vm15  ;;  %vm459_vm3 = vcmp.ne.s32.totalorder %v457_v46, 0 }
  0x2a   : > { %v405_v54 = vsub.f32 %v403_v49, %v1749_v6  ;;  %v407_v55 = vsub.f32 %v403_v49, %v1773_v19  ;;  %v1819_v56 = vsel %vm391_vm0, 1, %v1647_v29  ;;  %vm461_vm1 = vmand %vm451_vm2, %vm459_vm3  ;;  %vm469_vm4 = vcmp.ne.s32.totalorder %v467_v47, 0 }
  0x2b   : > { %v333_v57 = vsub.f32 1.0, %v329_v51  ;;  %v335_v58 = vsub.f32 1.0, %v331_v52  ;;  %vm1823_vm5 = vcmp.eq.s32.totalorder %v349_v53, 1  ;;  %v429_v60 = vrot.slane %v1819_v56, %v1758_v11  ;;  %vm471_vm6 = vmand %vm461_vm1, %vm469_vm4 }
  0x2c   : > { %v409_v61 = vand.u32 2147483647, %v405_v54  ;;  %v411_v62 = vand.u32 2147483647, %v407_v55  ;;  %v1829_v63 = vmin.f32 %v473_v50, 11.0  ;;  %v1832_v0 = vsel %vm471_vm6, 1, %v1647_v29 }
  0x2d   : > { %vm290_vm2 = vcmp.gt.f32.partialorder %v1743_v3, 0.0  ;;  %v337_v4 = vmax.f32 %v333_v57, 0.0  ;;  %v339_v5 = vmax.f32 %v335_v58, 0.0  ;;  %v509_v7 = vrot.slane %v1832_v0, %v1758_v11 }
  0x2e   : > { %v413_v12 = vsub.f32 1.0, %v409_v61  ;;  %v415_v14 = vsub.f32 1.0, %v411_v62  ;;  %v483_v15 = vrot.slane %v1829_v63, %v1753_v8  ;;  %vm1843_vm7 = vcmp.eq.s32.totalorder %v429_v60, 1 }
  0x2f   : > { %v355_v20 = vsel %vm1823_vm5, %v339_v5, 0.0  ;;  %v551_v22 = vrot.slane %v1808_v48, %v1762_v13  ;;  %v1852_v24 = vrot.slane %v1743_v3, %v648_v10  ;;  %v353_v31 = vsel %vm1823_vm5, %v337_v4, 0.0 }
  0x30   : > { %v417_v25 = vmax.f32 %v413_v12, 0.0  ;;  %v419_v28 = vmax.f32 %v415_v14, 0.0  ;;  %v485_v30 = vsub.f32 %v483_v15, %v1749_v6  ;;  %v487_v27 = vsub.f32 %v483_v15, %v1773_v19 }
  0x31   : > { %vm1858_vm8 = vcmp.eq.s32.totalorder %v509_v7, 1  ;;  %v593_v33 = vrot.slane %v1819_v56, %v1762_v13  ;;  %vm292_vm9 = vcmp.ge.f32.partialorder %v288_v9, -1.0  ;;  %vm370_vm10 = vcmp.gt.f32.partialorder %v1743_v3, 1.0 }
  0x32   : > { %v435_v2 = vsel %vm1843_vm7, %v419_v28, 0.0  ;;  %v489_v10 = vand.u32 2147483647, %v485_v30  ;;  %v491_v34 = vand.u32 2147483647, %v487_v27  ;;  %v635_v36 = vrot.slane %v1832_v0, %v1762_v13 }
  0x33   : > { %vm731_vm11 = vcmask 1043456   ;;  %v433_v37 = vsel %vm1843_vm7, %v417_v25, 0.0  ;;  %v439_v38 = vadd.f32 %v435_v2, %v355_v20  ;;  %v294_v39 = vsel %vm292_vm9, 1, %v1647_v29 }
  0x34   : > { %vm302_vm12 = vcmp.le.f32.partialorder %v288_v9, 12.0  ;;  %v493_v40 = vsub.f32 1.0, %v489_v10  ;;  %v495_v42 = vsub.f32 1.0, %v491_v34  ;;  %v296_v43 = vrot.slane %v294_v39, 6 }
  0x35   : > { %v304_v44 = vsel %vm302_vm12, 1, %v1647_v29  ;;  %vm450_vm13 = vcmp.gt.f32.partialorder %v1743_v3, 2.0  ;;  %v312_v46 = vmax.f32 %v288_v9, 0.0  ;;  %v368_v47 = vadd.f32 %v364_v26, %v1743_v3 }
  0x36   : > { %v306_v45 = vrot.slane %v304_v44, 6  ;;  %v448_v49 = vadd.f32 %v444_v16, %v1743_v3  ;;  %v1878_v50 = vmax.f32 %v493_v40, 0.0  ;;  %v499_v51 = vmax.f32 %v495_v42, 0.0 }
  0x37   : > { %vm298_vm14 = vcmp.ne.s32.totalorder %v296_v43, 0  ;;  %v1880_v52 = vadd.f32 %v433_v37, %v353_v31  ;;  %v314_v53 = vmin.f32 %v312_v46, 11.0  ;;  %vm372_vm3 = vcmp.ge.f32.partialorder %v368_v47, -1.0 }
  0x38   : > { %vm300_vm15 = vmand %vm290_vm2, %vm298_vm14  ;;  %vm308_vm0 = vcmp.ne.s32.totalorder %v306_v45, 0  ;;  %vm382_vm1 = vcmp.le.f32.partialorder %v368_v47, 12.0  ;;  %v513_v17 = vsel %vm1858_vm8, %v1878_v50, 0.0  ;;  %v515_v26 = vsel %vm1858_vm8, %v499_v51, 0.0 }
  0x39   : > { %vm310_vm4 = vmand %vm300_vm15, %vm308_vm0  ;;  %v374_v54 = vsel %vm372_vm3, 1, %v1647_v29  ;;  %v384_v55 = vsel %vm382_vm1, 1, %v1647_v29  ;;  %v519_v57 = vadd.f32 %v515_v26, %v439_v38  ;;  %v1892_v58 = vrot.slane %v314_v53, %v1753_v8 }
  0x3a   : > { %v340_v59 = vsel %vm310_vm4, 1, %v1647_v29  ;;  %v376_v60 = vrot.slane %v374_v54, 6  ;;  %v386_v62 = vrot.slane %v384_v55, 6  ;;  %v392_v4 = vmax.f32 %v368_v47, 0.0 }
  0x3b   : > { %v345_v61 = vrot.slane %v340_v59, %v1758_v11  ;;  %vm452_vm5 = vcmp.ge.f32.partialorder %v448_v49, -1.0  ;;  %v657_v5 = vmul.f32 %v1783_v23, %v519_v57  ;;  %v326_v7 = vsub.f32 %v1892_v58, %v1773_v19 }
  0x3c   : > { %vm378_vm6 = vcmp.ne.s32.totalorder %v376_v60, 0  ;;  %v454_v9 = vsel %vm452_vm5, 1, %v1647_v29  ;;  %vm388_vm9 = vcmp.ne.s32.totalorder %v386_v62, 0  ;;  %v394_v14 = vmin.f32 %v392_v4, 11.0  ;;  %v911_v60 = vld [vmem:[%s2388_s2] sm:$0xff] }
  0x3d   : > { %vm1900_vm2 = vcmp.eq.s32.totalorder %v345_v61, 1  ;;  %vm380_vm7 = vmand %vm370_vm10, %vm378_vm6  ;;  %v456_v15 = vrot.slane %v454_v9, 6  ;;  %1505 = vmatprep.subr.msk.mxu1 %vm731_vm11, %v657_v5  ;;  %v330_v16 = vand.u32 2147483647, %v326_v7  ;;  %vm462_vm14 = vcmp.le.f32.partialorder %v448_v49, 12.0  ;;  %1453 = vmatprep.subr.msk.mxu0 %vm731_vm11, %v657_v5 }
  0x3e   : > { %vm390_vm12 = vmand %vm380_vm7, %vm388_vm9  ;;  %v472_v20 = vmax.f32 %v448_v49, 0.0  ;;  %v1908_v21 = vrot.slane %v314_v53, %v1771_v18  ;;  %v1912_v25 = vrot.slane %v394_v14, %v1753_v8  ;;  %v464_v30 = vsel %vm462_vm14, 1, %v1647_v29 }
  0x3f   : > { %v420_v28 = vsel %vm390_vm12, 1, %v1647_v29  ;;  %vm458_vm10 = vcmp.ne.s32.totalorder %v456_v15, 0  ;;  %v334_v27 = vsub.f32 1.0, %v330_v16  ;;  %v466_v10 = vrot.slane %v464_v30, 6 }
  0x40   : > { %v425_v31 = vrot.slane %v420_v28, %v1758_v11  ;;  %vm1919_vm15 = vmand %vm450_vm13, %vm458_vm10  ;;  %v474_v34 = vmin.f32 %v472_v20, 11.0  ;;  %v406_v37 = vsub.f32 %v1912_v25, %v1773_v19  ;;  %v530_v38 = vsub.f32 %v1908_v21, %v1773_v19 }
  0x41   : > { %v547_v39 = vrot.slane %v340_v59, %v1762_v13  ;;  %v1929_v40 = vrot.slane %v394_v14, %v1771_v18  ;;  %v338_v42 = vmax.f32 %v334_v27, 0.0  ;;  %vm468_vm13 = vcmp.ne.s32.totalorder %v466_v10, 0  ;;  %v661_v14 = vld [vmem:[%s2387_s1 + $0x18] sm:$0xff] }
  0x42   : > { %vm1931_vm0 = vcmp.eq.s32.totalorder %v425_v31, 1  ;;  %v479_v43 = vrot.slane %v474_v34, %v1753_v8  ;;  %v410_v44 = vand.u32 2147483647, %v406_v37  ;;  %vm470_vm3 = vmand %vm1919_vm15, %vm468_vm13  ;;  %v534_v45 = vand.u32 2147483647, %v530_v38 }
  0x43   : > { %vm1938_vm1 = vcmp.eq.s32.totalorder %v547_v39, 1  ;;  %v572_v47 = vsub.f32 %v1929_v40, %v1773_v19  ;;  %v354_v49 = vsel %vm1900_vm2, %v338_v42, 0.0  ;;  %v500_v53 = vsel %vm470_vm3, 1, %v1647_v29 }
  0x44   : > { %v486_v51 = vsub.f32 %v479_v43, %v1773_v19  ;;  %v589_v8 = vrot.slane %v420_v28, %v1762_v13  ;;  %v414_v26 = vsub.f32 1.0, %v410_v44  ;;  %v505_v54 = vrot.slane %v500_v53, %v1758_v11 }
  0x45   : > { %v538_v55 = vsub.f32 1.0, %v534_v45  ;;  %v576_v57 = vand.u32 2147483647, %v572_v47  ;;  %v1955_v61 = vrot.slane %v474_v34, %v1771_v18  ;;  %v631_v62 = vrot.slane %v500_v53, %v1762_v13 }
  0x46   : > { %v490_v59 = vand.u32 2147483647, %v486_v51  ;;  %vm1950_vm4 = vcmp.eq.s32.totalorder %v589_v8, 1  ;;  %v418_v4 = vmax.f32 %v414_v26, 0.0  ;;  %vm1958_vm5 = vcmp.eq.s32.totalorder %v505_v54, 1 }
  0x47   : > { %v542_v5 = vmax.f32 %v538_v55, 0.0  ;;  %v580_v7 = vsub.f32 1.0, %v576_v57  ;;  %v614_v9 = vsub.f32 %v1955_v61, %v1773_v19  ;;  %vm1964_vm6 = vcmp.eq.s32.totalorder %v631_v62, 1 }
  0x48   : > { %v494_v11 = vsub.f32 1.0, %v490_v59  ;;  %v517_v15 = vadd.f32 %v513_v17, %v1880_v52  ;;  %v434_v16 = vsel %vm1931_vm0, %v418_v4, 0.0  ;;  %v324_v30 = vsub.f32 %v1892_v58, %v1749_v6 }
  0x49   : > { %v556_v20 = vsel %vm1938_vm1, %v542_v5, 0.0  ;;  %v584_v28 = vmax.f32 %v580_v7, 0.0  ;;  %v438_v27 = vadd.f32 %v434_v16, %v354_v49  ;;  %v618_v2 = vand.u32 2147483647, %v614_v9 }
  0x4a   : > { %v498_v31 = vmax.f32 %v494_v11, 0.0  ;;  %v655_v10 = vmul.f32 %v1783_v23, %v517_v15  ;;  %vm1983_vm8 = vcmp.eq.s32.totalorder %v551_v22, 1  ;;  %vm1990_vm7 = vcmp.eq.s32.totalorder %v593_v33, 1 }
  0x4b   : > { %v598_v52 = vsel %vm1950_vm4, %v584_v28, 0.0  ;;  %v328_v17 = vand.u32 2147483647, %v324_v30  ;;  %v404_v23 = vsub.f32 %v1912_v25, %v1749_v6  ;;  %v484_v48 = vsub.f32 %v479_v43, %v1749_v6 }
  0x4c   : > { %v514_v22 = vsel %vm1958_vm5, %v498_v31, 0.0  ;;  %v622_v58 = vsub.f32 1.0, %v618_v2  ;;  %v527_v56 = vrot.slane %v1794_v35, %v1771_v18  ;;  %v569_v33 = vrot.slane %v1801_v41, %v1771_v18 }
  0x4d   : > { %vm2008_vm9 = vcmp.eq.s32.totalorder %v635_v36, 1  ;;  %v518_v25 = vadd.f32 %v514_v22, %v438_v27  ;;  %v332_v37 = vsub.f32 1.0, %v328_v17  ;;  %v408_v38 = vand.u32 2147483647, %v404_v23  ;;  %v674_v17 = vld [vmem:[%s2387_s1 + $0x80] sm:$0xff] }
  0x4e   : > { %v488_v39 = vand.u32 2147483647, %v484_v48  ;;  %v626_v42 = vmax.f32 %v622_v58, 0.0  ;;  %v531_v43 = vsub.f32 %v527_v56, %v1773_v19  ;;  %v573_v44 = vsub.f32 %v569_v33, %v1773_v19 }
  0x4f   : > { %v611_v35 = vrot.slane %v1829_v63, %v1771_v18  ;;  %v656_v41 = vmul.f32 %v1852_v24, %v518_v25  ;;  %v336_v45 = vmax.f32 %v332_v37, 0.0  ;;  %v412_v13 = vsub.f32 1.0, %v408_v38 }
  0x50   : > { %v492_v0 = vsub.f32 1.0, %v488_v39  ;;  %v640_v36 = vsel %vm1964_vm6, %v626_v42, 0.0  ;;  %vm676_vm12 = vcmask 97280   ;;  %v535_v47 = vand.u32 2147483647, %v531_v43  ;;  %v675_v43 = vld [vmem:[%s2387_s1 + $0x88] sm:$0xff] }
  0x51   : > { %v577_v49 = vand.u32 2147483647, %v573_v44  ;;  %v615_v51 = vsub.f32 %v611_v35, %v1773_v19  ;;  %1507 = vmatpush1.msk.msra.mxu1 %vm731_vm11, %v656_v41  ;;  %v352_v53 = vsel %vm1900_vm2, %v336_v45, 0.0  ;;  %v416_v8 = vmax.f32 %v412_v13, 0.0  ;;  %1454 = vmatpush1.msk.msra.mxu0 %vm731_vm11, %v656_v41 }
  0x52   : > { %v496_v18 = vmax.f32 %v492_v0, 0.0  ;;  %v602_v63 = vadd.f32 %v598_v52, %v556_v20  ;;  %1506 = vmatprep.subr.mxu1 %v655_v10  ;;  %768 = vmatprep.subr.mxu0 %v655_v10  ;;  %v539_v26 = vsub.f32 1.0, %v535_v47  ;;  %v529_v57 = vsub.f32 %v527_v56, %v1749_v6  ;;  %v659_v0 = vld [vmem:[%s2387_s1 + $0x8] sm:$0xff] }
  0x53   : > { %v581_v54 = vsub.f32 1.0, %v577_v49  ;;  %v619_v55 = vand.u32 2147483647, %v615_v51  ;;  %v432_v19 = vsel %vm1931_vm0, %v416_v8, 0.0  ;;  %v571_v62 = vsub.f32 %v569_v33, %v1749_v6  ;;  %v660_v49 = vld [vmem:[%s2387_s1 + $0x10] sm:$0xff]  ;;  %v662_v8 = vld [vmem:[%s2387_s1 + $0x20] sm:$0xff] }
  0x54   : > { %v512_v59 = vsel %vm1958_vm5, %v496_v18, 0.0  ;;  %v644_v12 = vadd.f32 %v640_v36, %v602_v63  ;;  %v436_v4 = vadd.f32 %v432_v19, %v352_v53  ;;  %v543_v5 = vmax.f32 %v539_v26, 0.0  ;;  %v912_v53 = vld [vmem:[%s2388_s2 + $0x8] sm:$0xff]  ;;  %v913_v18 = vld [vmem:[%s2388_s2 + $0x10] sm:$0xff]  ;;  %v914_v26 = vld [vmem:[%s2388_s2 + $0x18] sm:$0xff] }
  0x55   : > { %v585_v7 = vmax.f32 %v581_v54, 0.0  ;;  %v623_v11 = vsub.f32 1.0, %v619_v55  ;;  %v533_v9 = vand.u32 2147483647, %v529_v57  ;;  %v575_v15 = vand.u32 2147483647, %v571_v62 }
  0x56   : > { %v613_v16 = vsub.f32 %v611_v35, %v1749_v6  ;;  %v528_v20 = vsub.f32 %v1908_v21, %v1749_v6  ;;  %v516_v28 = vadd.f32 %v512_v59, %v436_v4  ;;  %v557_v3 = vsel %vm1983_vm8, %v543_v5, 0.0  ;;  %v663_v63 = vld [vmem:[%s2387_s1 + $0x28] sm:$0xff]  ;;  %v664_v54 = vld [vmem:[%s2387_s1 + $0x30] sm:$0xff]  ;;  %v915_v55 = vld [vmem:[%s2388_s2 + $0x20] sm:$0xff] }
  0x57   : > { %v599_v29 = vsel %vm1990_vm7, %v585_v7, 0.0  ;;  %v627_v30 = vmax.f32 %v623_v11, 0.0  ;;  %v537_v31 = vsub.f32 1.0, %v533_v9  ;;  %v579_v2 = vsub.f32 1.0, %v575_v15  ;;  %v665_v57 = vld [vmem:[%s2387_s1 + $0x38] sm:$0xff]  ;;  %v916_v19 = vld [vmem:[%s2388_s2 + $0x28] sm:$0xff] }
  0x58   : > { %v603_v27 = vadd.f32 %v599_v29, %v557_v3  ;;  %v617_v10 = vand.u32 2147483647, %v613_v16  ;;  %v654_v52 = vmul.f32 %v1852_v24, %v516_v28  ;;  %v532_v23 = vand.u32 2147483647, %v528_v20  ;;  %v658_v24 = vld [vmem:[%s2387_s1] sm:$0xff]  ;;  %v667_v62 = vld [vmem:[%s2387_s1 + $0x48] sm:$0xff] }
  0x59   : > { %v641_v21 = vsel %vm2008_vm9, %v627_v30, 0.0  ;;  %v570_v48 = vsub.f32 %v1929_v40, %v1749_v6  ;;  %v541_v58 = vmax.f32 %v537_v31, 0.0  ;;  %v583_v56 = vmax.f32 %v579_v2, 0.0  ;;  %v666_v59 = vld [vmem:[%s2387_s1 + $0x40] sm:$0xff]  ;;  %v918_v4 = vld [vmem:[%s2388_s2 + $0x38] sm:$0xff]  ;;  %v668_v5 = vld [vmem:[%s2387_s1 + $0x50] sm:$0xff] }
  0x5a   : > { %v645_v22 = vadd.f32 %v641_v21, %v603_v27  ;;  %v621_v33 = vsub.f32 1.0, %v617_v10  ;;  %1508 = vmatpush1.msra.mxu1 %v654_v52  ;;  %769 = vmatpush1.msra.mxu0 %v654_v52  ;;  %v536_v25 = vsub.f32 1.0, %v532_v23  ;;  %v612_v38 = vsub.f32 %v1955_v61, %v1749_v6  ;;  %v919_v7 = vld [vmem:[%s2388_s2 + $0x40] sm:$0xff]  ;;  %v669_v11 = vld [vmem:[%s2387_s1 + $0x58] sm:$0xff]  ;;  %v920_v9 = vld [vmem:[%s2388_s2 + $0x48] sm:$0xff] }
  0x5b   : > { %v574_v37 = vand.u32 2147483647, %v570_v48  ;;  %1471 = vmatmul.mubr.msk.f32.vlgmr.msra.gmra.mxu1 %vm676_vm12, %v674_v17  ;;  %v555_v40 = vsel %vm1983_vm8, %v541_v58, 0.0  ;;  %v597_v39 = vsel %vm1990_vm7, %v583_v56, 0.0  ;;  %1455 = vmatmul.mubr.msk.f32.vlgmr.msra.gmra.mxu0 %vm676_vm12, %v658_v24  ;;  %v670_v15 = vld [vmem:[%s2387_s1 + $0x60] sm:$0xff]  ;;  %v921_v16 = vld [vmem:[%s2388_s2 + $0x50] sm:$0xff] }
  0x5c   : > { %1473 = vmatprep.subr.msk.mxu1 %vm731_vm11, %v645_v22  ;;  %v625_v42 = vmax.f32 %v621_v33, 0.0  ;;  %904 = vmatprep.mubr.f32.mxu1 %v1646_v1  ;;  %v601_v6 = vadd.f32 %v597_v39, %v555_v40  ;;  %v540_v61 = vmax.f32 %v536_v25, 0.0  ;;  %v616_v35 = vand.u32 2147483647, %v612_v38  ;;  %v671_v20 = vld [vmem:[%s2387_s1 + $0x68] sm:$0xff]  ;;  %v922_v28 = vld [vmem:[%s2388_s2 + $0x58] sm:$0xff] }
  0x5d   : > { %1474 = vmatpush1.msk.msra.mxu1 %vm731_vm11, %v644_v12  ;;  %v578_v44 = vsub.f32 1.0, %v574_v37  ;;  %808 = vmatprep.mubr.f32.mxu0 %v1646_v1  ;;  %v917_v12 = vld [vmem:[%s2388_s2 + $0x30] sm:$0xff]  ;;  %v923_v29 = vld [vmem:[%s2388_s2 + $0x60] sm:$0xff]  ;;  %v673_v30 = vld [vmem:[%s2387_s1 + $0x78] sm:$0xff]  ;;  %vm1206_vm11 = vcmask 130048  }
  0x5e   : > { %v639_v32 = vsel %vm2008_vm9, %v625_v42, 0.0  ;;  %v554_v41 = vsel %vm1938_vm1, %v540_v61, 0.0  ;;  %v620_v13 = vsub.f32 1.0, %v616_v35  ;;  %v672_v3 = vld [vmem:[%s2387_s1 + $0x70] sm:$0xff]  ;;  %v924_v27 = vld [vmem:[%s2388_s2 + $0x68] sm:$0xff]  ;;  %v926_v2 = vld [vmem:[%s2388_s2 + $0x78] sm:$0xff] }
  0x5f   : > { %v643_v50 = vadd.f32 %v639_v32, %v601_v6  ;;  %v582_v45 = vmax.f32 %v578_v44, 0.0  ;;  %1472 = vmatmul.mubr.msk.f32.gmra.mxu1 %vm676_vm12, %v675_v43  ;;  %1456 = vmatmul.mubr.msk.f32.gmra.mxu0 %vm676_vm12, %v659_v0  ;;  %v925_v31 = vld [vmem:[%s2388_s2 + $0x70] sm:$0xff]  ;;  %v927_v10 = vld [vmem:[%s2388_s2 + $0x80] sm:$0xff]  ;;  %v928_v52 = vld [vmem:[%s2388_s2 + $0x88] sm:$0xff] }
  0x60   : > { %v624_v34 = vmax.f32 %v620_v13, 0.0  ;;  %1053 = vmatprep.mubr.f32.mxu1 %v1646_v1  ;;  %814 = vmatprep.mubr.f32.mxu0 %v1646_v1  ;;  %v1199_v17 = vld [vmem:[%s2240_s8 + $0x8] sm:$0xff] }
  0x61   : > { %1019 = vmatprep.subr.mxu1 %v643_v50  ;;  %v596_v36 = vsel %vm1950_vm4, %v582_v45, 0.0 }
  0x62   : > { %v600_v47 = vadd.f32 %v596_v36, %v554_v41  ;;  %v638_v46 = vsel %vm1964_vm6, %v624_v34, 0.0 }
  0x63   : > { %1457 = vmatmul.mubr.msk.f32.gmra.mxu0 %vm676_vm12, %v660_v49 }
  0x64   : > { %v642_v51 = vadd.f32 %v638_v46, %v600_v47  ;;  %820 = vmatprep.mubr.f32.mxu0 %v1646_v1 }
  0x66   : > { %1020 = vmatpush1.msra.mxu1 %v642_v51 }
  0x67   : > { %1475 = vmatmul.mubr.msk.f32.vlgmr.msra.gmra.mxu1 %vm676_vm12, %v911_v60  ;;  %1458 = vmatmul.mubr.msk.f32.gmra.mxu0 %vm676_vm12, %v661_v14 }
  0x68   : > { %1059 = vmatprep.mubr.f32.mxu1 %v1646_v1  ;;  %826 = vmatprep.mubr.f32.mxu0 %v1646_v1 }
  0x6b   : > { %1476 = vmatmul.mubr.msk.f32.gmra.mxu1 %vm676_vm12, %v912_v53  ;;  %1459 = vmatmul.mubr.msk.f32.gmra.mxu0 %vm676_vm12, %v662_v8 }
  0x6c   : > { %1065 = vmatprep.mubr.f32.mxu1 %v1646_v1  ;;  %832 = vmatprep.mubr.f32.mxu0 %v1646_v1 }
  0x6f   : > { %1477 = vmatmul.mubr.msk.f32.gmra.mxu1 %vm676_vm12, %v913_v18  ;;  %1460 = vmatmul.mubr.msk.f32.gmra.mxu0 %vm676_vm12, %v663_v63 }
  0x70   : > { %1071 = vmatprep.mubr.f32.mxu1 %v1646_v1  ;;  %838 = vmatprep.mubr.f32.mxu0 %v1646_v1 }
  0x73   : > { %1478 = vmatmul.mubr.msk.f32.gmra.mxu1 %vm676_vm12, %v914_v26  ;;  %1461 = vmatmul.mubr.msk.f32.gmra.mxu0 %vm676_vm12, %v664_v54 }
  0x74   : > { %1077 = vmatprep.mubr.f32.mxu1 %v1646_v1  ;;  %844 = vmatprep.mubr.f32.mxu0 %v1646_v1 }
  0x77   : > { %1479 = vmatmul.mubr.msk.f32.gmra.mxu1 %vm676_vm12, %v915_v55  ;;  %1462 = vmatmul.mubr.msk.f32.gmra.mxu0 %vm676_vm12, %v665_v57 }
  0x78   : > { %1083 = vmatprep.mubr.f32.mxu1 %v1646_v1  ;;  %850 = vmatprep.mubr.f32.mxu0 %v1646_v1 }
  0x7b   : > { %1480 = vmatmul.mubr.msk.f32.gmra.mxu1 %vm676_vm12, %v916_v19  ;;  %1463 = vmatmul.mubr.msk.f32.gmra.mxu0 %vm676_vm12, %v666_v59 }
  0x7c   : > { %1089 = vmatprep.mubr.f32.mxu1 %v1646_v1  ;;  %856 = vmatprep.mubr.f32.mxu0 %v1646_v1 }
  0x7f   : > { %1481 = vmatmul.mubr.msk.f32.gmra.mxu1 %vm676_vm12, %v917_v12  ;;  %1464 = vmatmul.mubr.msk.f32.gmra.mxu0 %vm676_vm12, %v667_v62 }
  0x80   : > { %1095 = vmatprep.mubr.f32.mxu1 %v1646_v1  ;;  %862 = vmatprep.mubr.f32.mxu0 %v1646_v1 }
  0x83   : > { %1482 = vmatmul.mubr.msk.f32.gmra.mxu1 %vm676_vm12, %v918_v4  ;;  %1465 = vmatmul.mubr.msk.f32.gmra.mxu0 %vm676_vm12, %v668_v5 }
  0x84   : > { %1101 = vmatprep.mubr.f32.mxu1 %v1646_v1  ;;  %868 = vmatprep.mubr.f32.mxu0 %v1646_v1 }
  0x87   : > { %1483 = vmatmul.mubr.msk.f32.gmra.mxu1 %vm676_vm12, %v919_v7  ;;  %1466 = vmatmul.mubr.msk.f32.gmra.mxu0 %vm676_vm12, %v669_v11 }
  0x88   : > { %1107 = vmatprep.mubr.f32.mxu1 %v1646_v1  ;;  %874 = vmatprep.mubr.f32.mxu0 %v1646_v1 }
  0x8b   : > { %1484 = vmatmul.mubr.msk.f32.gmra.mxu1 %vm676_vm12, %v920_v9  ;;  %1467 = vmatmul.mubr.msk.f32.gmra.mxu0 %vm676_vm12, %v670_v15 }
  0x8c   : > { %1113 = vmatprep.mubr.f32.mxu1 %v1646_v1  ;;  %880 = vmatprep.mubr.f32.mxu0 %v1646_v1 }
  0x8f   : > { %1485 = vmatmul.mubr.msk.f32.gmra.mxu1 %vm676_vm12, %v921_v16  ;;  %1468 = vmatmul.mubr.msk.f32.gmra.mxu0 %vm676_vm12, %v671_v20 }
  0x90   : > { %1119 = vmatprep.mubr.f32.mxu1 %v1646_v1  ;;  %886 = vmatprep.mubr.f32.mxu0 %v1646_v1 }
  0x93   : > { %1486 = vmatmul.mubr.msk.f32.gmra.mxu1 %vm676_vm12, %v922_v28  ;;  %1469 = vmatmul.mubr.msk.f32.gmra.mxu0 %vm676_vm12, %v672_v3 }
  0x94   : > { %1125 = vmatprep.mubr.f32.mxu1 %v1646_v1  ;;  %892 = vmatprep.mubr.f32.mxu0 %v1646_v1 }
  0x97   : > { %1487 = vmatmul.mubr.msk.f32.gmra.mxu1 %vm676_vm12, %v923_v29  ;;  %1470 = vmatmul.mubr.msk.f32.gmra.mxu0 %vm676_vm12, %v673_v30 }
  0x98   : > { %1131 = vmatprep.mubr.f32.mxu1 %v1646_v1  ;;  %1493 = vmatprep.mubr.msk.f32.mxu0 %vm1206_vm11, %v1199_v17 }
  0x9b   : > { %1488 = vmatmul.mubr.msk.f32.gmra.mxu1 %vm676_vm12, %v924_v27 }
  0x9c   : > { %1137 = vmatprep.mubr.f32.mxu1 %v1646_v1 }
  0x9f   : > { %1489 = vmatmul.mubr.msk.f32.gmra.mxu1 %vm676_vm12, %v925_v31 }
  0xa0   : > { %1143 = vmatprep.mubr.f32.mxu1 %v1646_v1 }
  0xa3   : > { %1490 = vmatmul.mubr.msk.f32.gmra.mxu1 %vm676_vm12, %v926_v2 }
  0xa4   : > { %1149 = vmatprep.mubr.f32.mxu1 %v1646_v1 }
  0xa7   : > { %1491 = vmatmul.mubr.msk.f32.gmra.mxu1 %vm676_vm12, %v927_v10 }
  0xa8   : > { %1155 = vmatprep.mubr.f32.mxu1 %v1646_v1 }
  0xab   : > { %1492 = vmatmul.mubr.msk.f32.gmra.mxu1 %vm676_vm12, %v928_v52 }
 0x11b   : > { %v2244_v21 = vpop.f32.mrf.mxu1  ;;  %v804_v23 = vpop.f32.mrf.mxu0 }
 0x11c   : > { %2419 = vst [vmem:[#allocation5_spill] sm:$0xff] %v2244_v21 }
 0x11d   : > { %v2246_v1 = vpop.f32.mrf.mxu1  ;;  %v806_v22 = vpop.f32.mrf.mxu0 }
 0x11e   : > { %2420 = vst [vmem:[#allocation6_spill] sm:$0xff] %v2246_v1 }
 0x11f   : > { %v2248_v48 = vpop.f32.mrf.mxu1  ;;  %v810_v58 = vpop.f32.mrf.mxu0 }
 0x120   : > { %2421 = vst [vmem:[#allocation7_spill] sm:$0xff] %v2248_v48 }
 0x121   : > { %v2250_v56 = vpop.f32.mrf.mxu1  ;;  %v812_v33 = vpop.f32.mrf.mxu0 }
 0x123   : > { %v816_v24 = vpop.f32.mrf.mxu0 }
 0x125   : > { %v818_v38 = vpop.f32.mrf.mxu0 }
 0x127   : > { %v1055_v25 = vpop.f32.mrf.mxu1  ;;  %v822_v42 = vpop.f32.mrf.mxu0 }
 0x128   : > { %v2252_v37 = vmul.f32 %v1055_v25, %v804_v23 }
 0x129   : > { %v1057_v40 = vpop.f32.mrf.mxu1  ;;  %v824_v61 = vpop.f32.mrf.mxu0 }
 0x12a   : > { %2422 = vst [vmem:[#allocation8_spill] sm:$0xff] %v2252_v37  ;;  %v2254_v39 = vmul.f32 %v1057_v40, %v806_v22 }
 0x12b   : > { %v1061_v43 = vpop.f32.mrf.mxu1  ;;  %v828_v32 = vpop.f32.mrf.mxu0 }
 0x12c   : > { %2423 = vst [vmem:[#allocation9_spill] sm:$0xff] %v2254_v39  ;;  %v2256_v6 = vmul.f32 %v1061_v43, %v810_v58 }
 0x12d   : > { %v1063_v44 = vpop.f32.mrf.mxu1  ;;  %v830_v45 = vpop.f32.mrf.mxu0 }
 0x12e   : > { %v2258_v35 = vmul.f32 %v1063_v44, %v812_v33 }
 0x12f   : > { %v1067_v50 = vpop.f32.mrf.mxu1  ;;  %v2264_v36 = vpop.f32.mrf.mxu0 }
 0x130   : > { %v2260_v41 = vmul.f32 %v1067_v50, %v816_v24 }
 0x131   : > { %v1069_v13 = vpop.f32.mrf.mxu1  ;;  %v2268_v46 = vpop.f32.mrf.mxu0 }
 0x132   : > { %v2262_v0 = vmul.f32 %v1069_v13, %v818_v38 }
 0x133   : > { %v1073_v34 = vpop.f32.mrf.mxu1  ;;  %v2272_v60 = vpop.f32.mrf.mxu0 }
 0x134   : > { %v2266_v47 = vmul.f32 %v1073_v34, %v822_v42 }
 0x135   : > { %v1075_v49 = vpop.f32.mrf.mxu1  ;;  %v2276_v8 = vpop.f32.mrf.mxu0 }
 0x136   : > { %v2270_v51 = vmul.f32 %v1075_v49, %v824_v61 }
 0x137   : > { %v1079_v14 = vpop.f32.mrf.mxu1  ;;  %v2280_v26 = vpop.f32.mrf.mxu0 }
 0x138   : > { %v2274_v53 = vmul.f32 %v1079_v14, %v828_v32 }
 0x139   : > { %v1081_v18 = vpop.f32.mrf.mxu1  ;;  %v2284_v55 = vpop.f32.mrf.mxu0 }
 0x13a   : > { %v2278_v63 = vmul.f32 %v1081_v18, %v830_v45 }
 0x13b   : > { %v2282_v54 = vpop.f32.mrf.mxu1  ;;  %v2288_v19 = vpop.f32.mrf.mxu0 }
 0x13d   : > { %v2286_v57 = vpop.f32.mrf.mxu1  ;;  %v854_v12 = vpop.f32.mrf.mxu0 }
 0x13f   : > { %v2290_v59 = vpop.f32.mrf.mxu1  ;;  %v858_v4 = vpop.f32.mrf.mxu0 }
 0x141   : > { %v2292_v62 = vpop.f32.mrf.mxu1  ;;  %v860_v7 = vpop.f32.mrf.mxu0 }
 0x143   : > { %v2294_v5 = vpop.f32.mrf.mxu1  ;;  %v864_v9 = vpop.f32.mrf.mxu0 }
 0x145   : > { %v1099_v11 = vpop.f32.mrf.mxu1  ;;  %v866_v16 = vpop.f32.mrf.mxu0 }
 0x147   : > { %v1103_v15 = vpop.f32.mrf.mxu1  ;;  %v870_v28 = vpop.f32.mrf.mxu0 }
 0x149   : > { %v1105_v20 = vpop.f32.mrf.mxu1  ;;  %v872_v29 = vpop.f32.mrf.mxu0 }
 0x14b   : > { %v1109_v3 = vpop.f32.mrf.mxu1  ;;  %v876_v27 = vpop.f32.mrf.mxu0 }
 0x14d   : > { %v1111_v30 = vpop.f32.mrf.mxu1  ;;  %v878_v2 = vpop.f32.mrf.mxu0 }
 0x14f   : > { %v1115_v31 = vpop.f32.mrf.mxu1  ;;  %v882_v52 = vpop.f32.mrf.mxu0 }
 0x151   : > { %v1117_v10 = vpop.f32.mrf.mxu1  ;;  %v884_v22 = vpop.f32.mrf.mxu0 }
 0x152   : > { %v1183_v39 = vmul.f32 %v1117_v10, %v866_v16 }
 0x153   : > { %v1121_v17 = vpop.f32.mrf.mxu1  ;;  %v888_v24 = vpop.f32.mrf.mxu0 }
 0x154   : > { %v1184_v48 = vmul.f32 %v1121_v17, %v870_v28 }
 0x155   : > { %v1123_v23 = vpop.f32.mrf.mxu1  ;;  %v890_v40 = vpop.f32.mrf.mxu0 }
 0x156   : > { %v1185_v37 = vmul.f32 %v1123_v23, %v872_v29 }
 0x157   : > { %v1127_v58 = vpop.f32.mrf.mxu1  ;;  %v894_v43 = vpop.f32.mrf.mxu0 }
 0x158   : > { %v1186_v1 = vmul.f32 %v1127_v58, %v876_v27  ;;  %v1177_v27 = vmul.f32 %v1099_v11, %v2284_v55  ;;  %v1172_v55 = vmul.f32 %v2282_v54, %v2264_v36  ;;  %v1203_v54 = vld [vmem:[%s2240_s8 + $0x28] sm:$0xff] }
 0x159   : > { %v1129_v33 = vpop.f32.mrf.mxu1  ;;  %v896_v32 = vpop.f32.mrf.mxu0 }
 0x15a   : > { %v1187_v21 = vmul.f32 %v1129_v33, %v878_v2 }
 0x15b   : > { %v1133_v25 = vpop.f32.mrf.mxu1 }
 0x15c   : > { %v1188_v18 = vmul.f32 %v1133_v25, %v882_v52  ;;  %v1178_v52 = vmul.f32 %v1103_v15, %v2288_v19 }
 0x15d   : > { %v1135_v38 = vpop.f32.mrf.mxu1 }
 0x15e   : > { %v1189_v14 = vmul.f32 %v1135_v38, %v884_v22  ;;  %v1179_v22 = vmul.f32 %v1105_v20, %v854_v12  ;;  %v1204_v12 = vld [vmem:[%s2240_s8 + $0x30] sm:$0xff] }
 0x15f   : > { %v1139_v42 = vpop.f32.mrf.mxu1 }
 0x160   : > { %v1190_v49 = vmul.f32 %v1139_v42, %v888_v24  ;;  %v1180_v24 = vmul.f32 %v1109_v3, %v858_v4 }
 0x161   : > { %v1141_v61 = vpop.f32.mrf.mxu1 }
 0x162   : > { %v1191_v34 = vmul.f32 %v1141_v61, %v890_v40  ;;  %v1181_v40 = vmul.f32 %v1111_v30, %v860_v7 }
 0x163   : > { %v1145_v44 = vpop.f32.mrf.mxu1 }
 0x164   : > { %v1192_v13 = vmul.f32 %v1145_v44, %v894_v43 }
 0x165   : > { %v1147_v50 = vpop.f32.mrf.mxu1 }
 0x166   : > { %v1193_v45 = vmul.f32 %v1147_v50, %v896_v32  ;;  %v1182_v32 = vmul.f32 %v1115_v31, %v864_v9 }
 0x168   : > { %1219 = vmatprep.subr.mxu0 %v1193_v45 }
 0x169   : > { %1220 = vmatpush1.msra.mxu0 %v1192_v13 }
 0x16a   : > { %1221 = vmatprep.subr.mxu0 %v1191_v34 }
 0x16b   : > { %1222 = vmatpush1.msra.mxu0 %v1190_v49 }
 0x16c   : > { %1223 = vmatprep.subr.mxu0 %v1189_v14 }
 0x16d   : > { %1224 = vmatpush1.msra.mxu0 %v1188_v18 }
 0x16e   : > { %1225 = vmatprep.subr.mxu0 %v1187_v21  ;;  %v1176_v21 = vmul.f32 %v2294_v5, %v2280_v26 }
 0x16f   : > { %1226 = vmatpush1.msra.mxu0 %v1186_v1  ;;  %v1151_v1 = vpop.f32.mrf.mxu1 }
 0x170   : > { %1227 = vmatprep.subr.mxu0 %v1185_v37  ;;  %v1174_v37 = vmul.f32 %v2290_v59, %v2272_v60  ;;  %v2424_v60 = vld [vmem:[#allocation9_spill] sm:$0xff]  ;;  %v1205_v59 = vld [vmem:[%s2240_s8 + $0x38] sm:$0xff] }
 0x171   : > { %1228 = vmatpush1.msra.mxu0 %v1184_v48  ;;  %v1175_v48 = vmul.f32 %v2292_v62, %v2276_v8  ;;  %v1153_v19 = vpop.f32.mrf.mxu1  ;;  %v2426_v8 = vld [vmem:[#allocation8_spill] sm:$0xff] }
 0x172   : > { %1229 = vmatprep.subr.mxu0 %v1183_v39  ;;  %v1173_v39 = vmul.f32 %v2286_v57, %v2268_v46  ;;  %v1202_v57 = vld [vmem:[%s2240_s8 + $0x20] sm:$0xff] }
 0x173   : > { %1230 = vmatpush1.msra.mxu0 %v1182_v32  ;;  %v1157_v26 = vpop.f32.mrf.mxu1 }
 0x174   : > { %1231 = vmatprep.subr.mxu0 %v1181_v40 }
 0x175   : > { %1232 = vmatpush1.msra.mxu0 %v1180_v24  ;;  %v1159_v46 = vpop.f32.mrf.mxu1 }
 0x176   : > { %1233 = vmatprep.subr.mxu0 %v1179_v22  ;;  %v1197_v36 = vmul.f32 %v1159_v46, %v2250_v56  ;;  %v1200_v56 = vld [vmem:[%s2240_s8 + $0x10] sm:$0xff] }
 0x177   : > { %1234 = vmatpush1.msra.mxu0 %v1178_v52 }
 0x178   : > { %1235 = vmatprep.subr.mxu0 %v1177_v27 }
 0x179   : > { %1236 = vmatpush1.msra.mxu0 %v1176_v21 }
 0x17a   : > { %1237 = vmatprep.subr.mxu0 %v1175_v48 }
 0x17b   : > { %1238 = vmatpush1.msra.mxu0 %v1174_v37 }
 0x17c   : > { %1239 = vmatprep.subr.mxu0 %v1173_v39 }
 0x17d   : > { %1240 = vmatpush1.msra.mxu0 %v1172_v55 }
 0x17e   : > { %1241 = vmatprep.subr.mxu0 %v2278_v63 }
 0x17f   : > { %1242 = vmatpush1.msra.mxu0 %v2274_v53  ;;  %v2425_v53 = vld [vmem:[#allocation7_spill] sm:$0xff] }
 0x180   : > { %1243 = vmatprep.subr.mxu0 %v2270_v51  ;;  %v1196_v51 = vmul.f32 %v1157_v26, %v2425_v53 }
 0x181   : > { %1244 = vmatpush1.msra.mxu0 %v2266_v47  ;;  %v2427_v47 = vld [vmem:[#allocation6_spill] sm:$0xff] }
 0x182   : > { %1245 = vmatprep.subr.mxu0 %v2262_v0  ;;  %v1195_v0 = vmul.f32 %v1153_v19, %v2427_v47 }
 0x183   : > { %1246 = vmatpush1.msra.mxu0 %v2260_v41  ;;  %v2428_v41 = vld [vmem:[#allocation5_spill] sm:$0xff] }
 0x184   : > { %1247 = vmatprep.subr.mxu0 %v2258_v35  ;;  %v1194_v63 = vmul.f32 %v1151_v1, %v2428_v41  ;;  %v1198_v35 = vld [vmem:[%s2240_s8] sm:$0xff] }
 0x185   : > { %1248 = vmatpush1.msra.mxu0 %v2256_v6  ;;  %v1201_v6 = vld [vmem:[%s2240_s8 + $0x18] sm:$0xff] }
 0x186   : > { %1249 = vmatprep.subr.mxu0 %v2424_v60 }
 0x187   : > { %1250 = vmatpush1.msra.mxu0 %v2426_v8 }
 0x188   : > { %1279 = vmatprep.subr.mxu0 %v1197_v36 }
 0x189   : > { %1280 = vmatpush2.msra.mxu0 %v1196_v51 }
 0x18a   : > { %1281 = vmatprep.subr.mxu0 %v1195_v0 }
 0x18b   : > { %1282 = vmatpush2.msra.mxu0 %v1194_v63 }
 0x18c   : > { %1284 = vmatmul.mubr.f32.vlgmr.msra.gmra.mxu0 %v1198_v35 }
 0x18d   : > { %1494 = vmatprep.mubr.msk.f32.mxu0 %vm1206_vm11, %v1201_v6 }
 0x190   : > { %1290 = vmatmul.mubr.f32.gmra.mxu0 %v1200_v56 }
 0x191   : > { %1495 = vmatprep.mubr.msk.f32.mxu0 %vm1206_vm11, %v1203_v54 }
 0x194   : > { %1296 = vmatmul.mubr.f32.gmra.mxu0 %v1202_v57 }
 0x195   : > { %1496 = vmatprep.mubr.msk.f32.mxu0 %vm1206_vm11, %v1205_v59 }
 0x198   : > { %1302 = vmatmul.mubr.f32.gmra.mxu0 %v1204_v12 }
 0x24c   : > { %v1285_v62 = vpop.f32.mrf.mxu0 }
 0x24d   : > { %1308 = vst [vmem:[%s251_s10] sm:$0xff] %v1285_v62 }
 0x24e   : > { %v1287_v4 = vpop.f32.mrf.mxu0 }
 0x24f   : > { %1309 = vst [vmem:[%s251_s10 + $0x8] sm:$0xff] %v1287_v4 }
 0x250   : > { %v1291_v5 = vpop.f32.mrf.mxu0 }
 0x251   : > { %1310 = vst [vmem:[%s251_s10 + $0x10] sm:$0xff] %v1291_v5 }
 0x252   : > { %v1293_v7 = vpop.f32.mrf.mxu0 }
 0x253   : > { %1311 = vst [vmem:[%s251_s10 + $0x18] sm:$0xff] %v1293_v7 }
 0x254   : > { %v1297_v11 = vpop.f32.mrf.mxu0 }
 0x255   : > { %1312 = vst [vmem:[%s251_s10 + $0x20] sm:$0xff] %v1297_v11 }
 0x256   : > { %v1299_v9 = vpop.f32.mrf.mxu0 }
 0x257   : > { %1313 = vst [vmem:[%s251_s10 + $0x28] sm:$0xff] %v1299_v9 }
 0x258   : > { %v1303_v15 = vpop.f32.mrf.mxu0 }
 0x259   : > { %1314 = vst [vmem:[%s251_s10 + $0x30] sm:$0xff] %v1303_v15 }
 0x25a   : > { %v1305_v16 = vpop.f32.mrf.mxu0 }
 0x25b   : > { %1315 = vst [vmem:[%s251_s10 + $0x38] sm:$0xff] %v1305_v16 }
 0x25c   : > { %1581 = shalt.err (!%p1578_p5)
}
 0x25d   : > { %s1582_s5 = scalar_lea.hbm %s2339_s21, 1024  ;;  %s1586_s8 = scalar_lea.hbm %s2390_s4, 2048 }
 0x25e   : > { %p1583_p6 = scmp.ne.s32.totalorder %s2339_s21, %s1582_s5  ;;  %p1587_p10 = scmp.lt.s32.totalorder %s2339_s21, %s2390_s4 }
 0x25f   : > { %p1588_p11 = scmp.lt.s32.totalorder %s1586_s8, %s1582_s5 }
 0x260   : > { %p1584_p7 = pnand %p1583_p6, %p1716_p4 }
 0x261   : > { %p1589_p12 = por %p1588_p11, %p1587_p10 }
 0x262   : > { %p1585_p9 = pneg %p1584_p7 }
 0x264   : > { %p1590_p13 = pnand %p1589_p12, %p1585_p9 }
 0x266   : > { %1593 = shalt.err (!%p1590_p13)
}
 0x267   : > { %s1649_s10 = smov 256   ;;  %s1650_s12 = smov 16  }
 0x268   : > { %1509 = dma.vmem_to_hbm [thread:$0]  (%p1716_p4), %s2334_s11, 1024, %s2339_s21, %s2341_s22, %s1649_s10, %s1649_s10, %s1650_s12  }
 0x269 PF: > { %p1515_p0 = scmp.ge.s32.totalorder %s1644_s20, 2  ;;  %s1350_s13 = sand.u32 1, %s1624_s15  }
 0x26a   : > { %s1351_s14 = scalar_lea.sflag [#allocation3], %s1350_s13 }
 0x26b   : > { %p1512_p1 = pnand %p1515_p0, %p1723_p8 }
 0x26d   : > { %p1513_p2 = pneg %p1512_p1 }
 0x26f   : > { %1619 = dma.done.wait (%p1513_p2), %s1351_s14, 1024  }
 0x270   : > { %1621 = vsyncadd (%p1513_p2), %s1351_s14, 4294966272  ;;  %s17_s20 = sadd.s32 1, %s1644_s20   ;;  %s2429_s15 = smov %s1628_s16 }
 0x271   : > { %p14_p3 = scmp.ge.s32.totalorder %s17_s20, 4   ;;  %s2430_s16 = smov %s1632_s17 }
 0x272   : > { %s2431_s17 = smov %s1729_s28  ;;  %s2432_s18 = smov %s1640_s19 }
 0x273   : > { %s2433_s19 = smov %s2435_s23  ;;  %16 = sbr.rel (!%p14_p3) target bundleno = 4 (0x4), region = 74 }
 0x278   :  { %1356 = vsyncpa [#allocation3], 1 }
 0x279   :  { %1358 = vsyncpa [#allocation3 + $0x1], 1 }

</bundles_post_ra>
